<compile_context>
chip_gen: v7x
topology: tpu7x:2x2x1
jax: 0.10.0
libtpu: 0.0.40
codegen_flags: <defaults>
</compile_context>

<pallas_src>
import math

import jax
import jax.numpy as jnp
from jax.experimental import pallas as pl
from jax.experimental.pallas import tpu as pltpu


def _make_mab_kernel(num_heads, scale):
    def kernel(q_ref, k_ref, wq_ref, bq_ref, wkv_ref, bkv_ref,
               wo_ref, bo_ref, w3_ref, b3_ref, w4_ref, b4_ref, o_ref):
        Bt, N, Dq = q_ref.shape
        _, M, Dk = k_ref.shape
        V = wq_ref.shape[1]
        dh = V // num_heads

        # Batch-fused projections: flatten (Bt, rows, feat) -> (Bt*rows, feat)
        # so the MXU sees many rows per push instead of N=8 at a time.
        qf = q_ref[...].reshape(Bt * N, Dq)
        kf = k_ref[...].reshape(Bt * M, Dk)

        q_proj = (jnp.dot(qf, wq_ref[...], preferred_element_type=jnp.float32)
                  + bq_ref[...]).reshape(Bt, N, V)

        # Merged K/V projection: one matmul against the (Dk, 2V) weight.
        kv = jnp.dot(kf, wkv_ref[...], preferred_element_type=jnp.float32) + bkv_ref[...]
        k_proj = kv[:, :V].reshape(Bt, M, V)
        v_proj = kv[:, V:].reshape(Bt, M, V)

        # Multi-head attention: static head loop, static lane slices.
        head_outs = []
        for h in range(num_heads):
            sl = slice(h * dh, (h + 1) * dh)
            qh = q_proj[:, :, sl]                          # (Bt, N, dh)
            kh = k_proj[:, :, sl]                          # (Bt, M, dh)
            vh = v_proj[:, :, sl]                          # (Bt, M, dh)
            e = jnp.einsum('bnd,bmd->bnm', qh, kh,
                           preferred_element_type=jnp.float32) * scale
            e = e - jnp.max(e, axis=-1, keepdims=True)
            p = jnp.exp(e)
            a = p / jnp.sum(p, axis=-1, keepdims=True)
            head_outs.append(jnp.einsum('bnm,bmd->bnd', a, vh,
                                        preferred_element_type=jnp.float32))
        attn = jnp.concatenate(head_outs, axis=-1).reshape(Bt * N, V)

        o = jnp.dot(attn, wo_ref[...], preferred_element_type=jnp.float32) + bo_ref[...]
        x = qf + o                                          # residual (needs Dq == V)

        # fc: Linear(V -> H) -> ReLU -> Linear(H -> V), residual.
        h2 = jnp.maximum(jnp.dot(x, w3_ref[...], preferred_element_type=jnp.float32)
                         + b3_ref[...], 0.0)
        x2 = x + jnp.dot(h2, w4_ref[...], preferred_element_type=jnp.float32) + b4_ref[...]

        o_ref[...] = x2.reshape(Bt, N, V).astype(o_ref.dtype)

    return kernel


def mab_forward(Q, K, wq_t, bq, wkv_t, bkv, wo_t, bo, w3_t, b3, w4_t, b4,
                *, num_heads, block_b=None):
    B, N, Dq = Q.shape
    _, M, Dk = K.shape
    V = wq_t.shape[1]
    assert V % num_heads == 0, "latent_size must be divisible by num_heads"
    assert Dq == V, "residual X = Q + attn(Q, K) requires dim_Q == latent_size"

    if block_b is None:
        # Aim for >= 128 MXU rows per grid step, while evenly dividing B.
        block_b = min(B, max(1, pl.cdiv(128, N)))
        while B % block_b != 0:
            block_b -= 1
    grid = (B // block_b,)

    scale = 1.0 / math.sqrt(V)
    kernel = _make_mab_kernel(num_heads, scale)

    def full(shape):
        return pl.BlockSpec(shape, lambda b, _n=len(shape): (0,) * _n)

    return pl.pallas_call(
        kernel,
        out_shape=jax.ShapeDtypeStruct((B, N, V), Q.dtype),
        grid=grid,
        in_specs=[
            pl.BlockSpec((block_b, N, Dq), lambda b: (b, 0, 0)),   # Q block
            pl.BlockSpec((block_b, M, Dk), lambda b: (b, 0, 0)),   # K block
            full(wq_t.shape),  full(bq.shape),                      # Wq^T, bq
            full(wkv_t.shape), full(bkv.shape),                     # [Wk|Wv]^T, [bk|bv]
            full(wo_t.shape),  full(bo.shape),                      # Wo^T, bo
            full(w3_t.shape),  full(b3.shape),                      # W3^T, b3
            full(w4_t.shape),  full(b4.shape),                      # W4^T, b4
        ],
        out_specs=pl.BlockSpec((block_b, N, V), lambda b: (b, 0, 0)),
        compiler_params=pltpu.CompilerParams(dimension_semantics=("parallel",)),
    )(Q, K, wq_t, bq, wkv_t, bkv, wo_t, bo, w3_t, b3, w4_t, b4)


def _linear_params(key, out_f, in_f):
    """Deterministic init mimicking nn.Linear default (uniform(-1/sqrt(in), 1/sqrt(in)))."""
    kw, kb = jax.random.split(key)
    bound = 1.0 / (in_f ** 0.5)
    w = jax.random.uniform(kw, (out_f, in_f), jnp.float32, -bound, bound)
    b = jax.random.uniform(kb, (out_f,), jnp.float32, -bound, bound)
    return w, b


def reference(Q, K, Wq, bq, Wk, bk, Wv, bv, Wo, bo, W3, b3, W4, b4, num_heads):
    """Pure-JAX reference mirroring the PyTorch MAB forward (eval mode, no mask)."""
    latent = Wq.shape[0]
    Q_ = Q @ Wq.T + bq
    K_ = K @ Wk.T + bk
    V_ = K @ Wv.T + bv
    Qh = jnp.stack(jnp.split(Q_, num_heads, axis=2), 0)    # (H, B, N, dh)
    Kh = jnp.stack(jnp.split(K_, num_heads, axis=2), 0)
    Vh = jnp.stack(jnp.split(V_, num_heads, axis=2), 0)
    E = Qh @ jnp.swapaxes(Kh, 2, 3) / math.sqrt(latent)
    A = jax.nn.softmax(E, axis=3)
    O = jnp.concatenate(list(A @ Vh), axis=-1)              # concat heads -> (B, N, latent)
    O = O @ Wo.T + bo
    X = Q + O
    h2 = jnp.maximum(X @ W3.T + b3, 0.0)
    return X + h2 @ W4.T + b4


if __name__ == "__main__":
    B, N, M = 2, 8, 16              # batch, query set size, key set size
    input_size = 128                # dim_Q (== latent so the residual is well-formed)
    attn_size = 128                 # dim_K (defaults to input_size in the module)
    latent, hidden = 128, 256       # lane-dense last dims
    num_heads = 4

    key = jax.random.PRNGKey(0)
    kq, kk, k1, k2, k3, k4, k5, k6 = jax.random.split(key, 8)

    Q = jax.random.normal(kq, (B, N, input_size), jnp.float32)
    K = jax.random.normal(kk, (B, M, attn_size), jnp.float32)

    Wq, bq = _linear_params(k1, latent, input_size)
    Wk, bk = _linear_params(k2, latent, attn_size)
    Wv, bv = _linear_params(k3, latent, attn_size)
    Wo, bo = _linear_params(k4, latent, latent)
    W3, b3 = _linear_params(k5, hidden, latent)
    W4, b4 = _linear_params(k6, latent, hidden)

    # Kernel-friendly layouts: transposed weights, merged K/V projection, 2-D biases.
    wq_t = Wq.T                                              # (Dq, V)
    wkv_t = jnp.concatenate([Wk.T, Wv.T], axis=1)            # (Dk, 2V)
    bkv = jnp.concatenate([bk, bv]).reshape(1, 2 * latent)
    wo_t = Wo.T                                              # (V, V)
    w3_t = W3.T                                              # (V, H)
    w4_t = W4.T                                              # (H, V)
    bq2 = bq.reshape(1, latent)
    bo2 = bo.reshape(1, latent)
    b32 = b3.reshape(1, hidden)
    b42 = b4.reshape(1, latent)

    out = mab_forward(Q, K, wq_t, bq2, wkv_t, bkv, wo_t, bo2, w3_t, b32, w4_t, b42,
                      num_heads=num_heads)
    out = jax.block_until_ready(out)

    ref = reference(Q, K, Wq, bq, Wk, bk, Wv, bv, Wo, bo, W3, b3, W4, b4, num_heads)
    assert out.shape == (B, N, latent)
    assert jnp.allclose(out, ref, rtol=1e-4, atol=1e-4), \
        f"max abs err {jnp.max(jnp.abs(out - ref))}"

    print("KERNEL_OK")
</pallas_src>

<mosaic_0001>
module attributes {stable_mosaic.version = 11 : i64} {
  func.func @kernel(%arg0: i32, %arg1: memref<2x8x128xf32, #tpu.memory_space<vmem>>, %arg2: memref<2x16x128xf32, #tpu.memory_space<vmem>>, %arg3: memref<128x128xf32, #tpu.memory_space<vmem>>, %arg4: memref<1x128xf32, #tpu.memory_space<vmem>>, %arg5: memref<128x256xf32, #tpu.memory_space<vmem>>, %arg6: memref<1x256xf32, #tpu.memory_space<vmem>>, %arg7: memref<128x128xf32, #tpu.memory_space<vmem>>, %arg8: memref<1x128xf32, #tpu.memory_space<vmem>>, %arg9: memref<128x256xf32, #tpu.memory_space<vmem>>, %arg10: memref<1x256xf32, #tpu.memory_space<vmem>>, %arg11: memref<256x128xf32, #tpu.memory_space<vmem>>, %arg12: memref<1x128xf32, #tpu.memory_space<vmem>>, %arg13: memref<2x8x128xf32, #tpu.memory_space<vmem>>) attributes {dimension_semantics = [#tpu.dimension_semantics<parallel>], iteration_bounds = array<i64: 1>, scalar_prefetch = 0 : i64, scratch_operands = 0 : i64, tpu.core_type = #tpu.core_type<tc>, window_params = [{transform_indices = @transform_0, window_bounds = array<i64: 2, 8, 128>}, {transform_indices = @transform_1, window_bounds = array<i64: 2, 16, 128>}, {pipeline_mode = #tpu.pipeline_mode<synchronous>, transform_indices = @transform_2, window_bounds = array<i64: 128, 128>}, {pipeline_mode = #tpu.pipeline_mode<synchronous>, transform_indices = @transform_3, window_bounds = array<i64: 1, 128>}, {pipeline_mode = #tpu.pipeline_mode<synchronous>, transform_indices = @transform_4, window_bounds = array<i64: 128, 256>}, {pipeline_mode = #tpu.pipeline_mode<synchronous>, transform_indices = @transform_5, window_bounds = array<i64: 1, 256>}, {pipeline_mode = #tpu.pipeline_mode<synchronous>, transform_indices = @transform_6, window_bounds = array<i64: 128, 128>}, {pipeline_mode = #tpu.pipeline_mode<synchronous>, transform_indices = @transform_7, window_bounds = array<i64: 1, 128>}, {pipeline_mode = #tpu.pipeline_mode<synchronous>, transform_indices = @transform_8, window_bounds = array<i64: 128, 256>}, {pipeline_mode = #tpu.pipeline_mode<synchronous>, transform_indices = @transform_9, window_bounds = array<i64: 1, 256>}, {pipeline_mode = #tpu.pipeline_mode<synchronous>, transform_indices = @transform_10, window_bounds = array<i64: 256, 128>}, {pipeline_mode = #tpu.pipeline_mode<synchronous>, transform_indices = @transform_11, window_bounds = array<i64: 1, 128>}, {transform_indices = @transform_12, window_bounds = array<i64: 2, 8, 128>}]} {
    %c0 = arith.constant 0 : index
    %c0_0 = arith.constant 0 : index
    %c0_1 = arith.constant 0 : index
    %0 = vector.load %arg1[%c0, %c0_0, %c0_1] : memref<2x8x128xf32, #tpu.memory_space<vmem>>, vector<2x8x128xf32>
    %1 = vector.shape_cast %0 : vector<2x8x128xf32> to vector<16x128xf32>
    %c0_2 = arith.constant 0 : index
    %c0_3 = arith.constant 0 : index
    %c0_4 = arith.constant 0 : index
    %2 = vector.load %arg2[%c0_2, %c0_3, %c0_4] : memref<2x16x128xf32, #tpu.memory_space<vmem>>, vector<2x16x128xf32>
    %3 = vector.shape_cast %2 : vector<2x16x128xf32> to vector<32x128xf32>
    %c0_5 = arith.constant 0 : index
    %c0_6 = arith.constant 0 : index
    %4 = vector.load %arg3[%c0_5, %c0_6] : memref<128x128xf32, #tpu.memory_space<vmem>>, vector<128x128xf32>
    %cst = arith.constant dense<0.000000e+00> : vector<16x128xf32>
    %5 = tpu.matmul %1, %4, %cst {dimension_numbers = #tpu.dot_dimension_numbers<[1], [0], [0], [1], [0, 0, 1, 1], [], []>} : vector<16x128xf32>, vector<128x128xf32>, vector<16x128xf32> -> vector<16x128xf32>
    %c0_7 = arith.constant 0 : index
    %c0_8 = arith.constant 0 : index
    %6 = vector.load %arg4[%c0_7, %c0_8] : memref<1x128xf32, #tpu.memory_space<vmem>>, vector<1x128xf32>
    %7 = vector.broadcast %6 : vector<1x128xf32> to vector<16x128xf32>
    %8 = arith.addf %5, %7 : vector<16x128xf32>
    %9 = vector.shape_cast %8 : vector<16x128xf32> to vector<2x8x128xf32>
    %c0_9 = arith.constant 0 : index
    %c0_10 = arith.constant 0 : index
    %10 = vector.load %arg5[%c0_9, %c0_10] : memref<128x256xf32, #tpu.memory_space<vmem>>, vector<128x256xf32>
    %cst_11 = arith.constant dense<0.000000e+00> : vector<32x256xf32>
    %11 = tpu.matmul %3, %10, %cst_11 {dimension_numbers = #tpu.dot_dimension_numbers<[1], [0], [0], [1], [0, 0, 1, 1], [], []>} : vector<32x128xf32>, vector<128x256xf32>, vector<32x256xf32> -> vector<32x256xf32>
    %c0_12 = arith.constant 0 : index
    %c0_13 = arith.constant 0 : index
    %12 = vector.load %arg6[%c0_12, %c0_13] : memref<1x256xf32, #tpu.memory_space<vmem>>, vector<1x256xf32>
    %13 = vector.broadcast %12 : vector<1x256xf32> to vector<32x256xf32>
    %14 = arith.addf %11, %13 : vector<32x256xf32>
    %15 = vector.extract_strided_slice %14 {offsets = [0, 0], sizes = [32, 128], strides = [1, 1]} : vector<32x256xf32> to vector<32x128xf32>
    %16 = vector.shape_cast %15 : vector<32x128xf32> to vector<2x16x128xf32>
    %17 = vector.extract_strided_slice %14 {offsets = [0, 128], sizes = [32, 128], strides = [1, 1]} : vector<32x256xf32> to vector<32x128xf32>
    %18 = vector.shape_cast %17 : vector<32x128xf32> to vector<2x16x128xf32>
    %19 = vector.extract_strided_slice %9 {offsets = [0, 0, 0], sizes = [2, 8, 32], strides = [1, 1, 1]} : vector<2x8x128xf32> to vector<2x8x32xf32>
    %20 = vector.extract_strided_slice %16 {offsets = [0, 0, 0], sizes = [2, 16, 32], strides = [1, 1, 1]} : vector<2x16x128xf32> to vector<2x16x32xf32>
    %21 = vector.extract_strided_slice %18 {offsets = [0, 0, 0], sizes = [2, 16, 32], strides = [1, 1, 1]} : vector<2x16x128xf32> to vector<2x16x32xf32>
    "tpu.trace_start"() <{level = 10 : i32, message = "bnd,bmd->bnm"}> : () -> ()
    %cst_14 = arith.constant dense<0.000000e+00> : vector<2x8x16xf32>
    %22 = tpu.matmul %19, %20, %cst_14 {dimension_numbers = #tpu.dot_dimension_numbers<[2], [2], [1], [1], [0, 0, 0, 1, 1, 1], [0], [0]>} : vector<2x8x32xf32>, vector<2x16x32xf32>, vector<2x8x16xf32> -> vector<2x8x16xf32>
    "tpu.trace_stop"() : () -> ()
    %cst_15 = arith.constant 0.0883883461 : f32
    %23 = vector.broadcast %cst_15 : f32 to vector<2x8x16xf32>
    %24 = arith.mulf %22, %23 : vector<2x8x16xf32>
    %cst_16 = arith.constant dense<0xFF800000> : vector<2x8xf32>
    %25 = vector.multi_reduction <maximumf>, %24, %cst_16 [2] : vector<2x8x16xf32> to vector<2x8xf32>
    %26 = vector.shape_cast %25 : vector<2x8xf32> to vector<2x8x1xf32>
    %27 = vector.broadcast %26 : vector<2x8x1xf32> to vector<2x8x16xf32>
    %28 = arith.subf %24, %27 : vector<2x8x16xf32>
    %29 = math.exp %28 : vector<2x8x16xf32>
    %cst_17 = arith.constant dense<0.000000e+00> : vector<2x8xf32>
    %30 = vector.multi_reduction <add>, %29, %cst_17 [2] : vector<2x8x16xf32> to vector<2x8xf32>
    %31 = vector.shape_cast %30 : vector<2x8xf32> to vector<2x8x1xf32>
    %32 = vector.broadcast %31 : vector<2x8x1xf32> to vector<2x8x16xf32>
    %33 = arith.divf %29, %32 : vector<2x8x16xf32>
    "tpu.trace_start"() <{level = 10 : i32, message = "bnm,bmd->bnd"}> : () -> ()
    %cst_18 = arith.constant dense<0.000000e+00> : vector<2x8x32xf32>
    %34 = tpu.matmul %33, %21, %cst_18 {dimension_numbers = #tpu.dot_dimension_numbers<[2], [1], [1], [2], [0, 0, 0, 1, 1, 2], [0], [0]>} : vector<2x8x16xf32>, vector<2x16x32xf32>, vector<2x8x32xf32> -> vector<2x8x32xf32>
    "tpu.trace_stop"() : () -> ()
    %35 = vector.extract_strided_slice %9 {offsets = [0, 0, 32], sizes = [2, 8, 32], strides = [1, 1, 1]} : vector<2x8x128xf32> to vector<2x8x32xf32>
    %36 = vector.extract_strided_slice %16 {offsets = [0, 0, 32], sizes = [2, 16, 32], strides = [1, 1, 1]} : vector<2x16x128xf32> to vector<2x16x32xf32>
    %37 = vector.extract_strided_slice %18 {offsets = [0, 0, 32], sizes = [2, 16, 32], strides = [1, 1, 1]} : vector<2x16x128xf32> to vector<2x16x32xf32>
    "tpu.trace_start"() <{level = 10 : i32, message = "bnd,bmd->bnm"}> : () -> ()
    %cst_19 = arith.constant dense<0.000000e+00> : vector<2x8x16xf32>
    %38 = tpu.matmul %35, %36, %cst_19 {dimension_numbers = #tpu.dot_dimension_numbers<[2], [2], [1], [1], [0, 0, 0, 1, 1, 1], [0], [0]>} : vector<2x8x32xf32>, vector<2x16x32xf32>, vector<2x8x16xf32> -> vector<2x8x16xf32>
    "tpu.trace_stop"() : () -> ()
    %cst_20 = arith.constant 0.0883883461 : f32
    %39 = vector.broadcast %cst_20 : f32 to vector<2x8x16xf32>
    %40 = arith.mulf %38, %39 : vector<2x8x16xf32>
    %cst_21 = arith.constant dense<0xFF800000> : vector<2x8xf32>
    %41 = vector.multi_reduction <maximumf>, %40, %cst_21 [2] : vector<2x8x16xf32> to vector<2x8xf32>
    %42 = vector.shape_cast %41 : vector<2x8xf32> to vector<2x8x1xf32>
    %43 = vector.broadcast %42 : vector<2x8x1xf32> to vector<2x8x16xf32>
    %44 = arith.subf %40, %43 : vector<2x8x16xf32>
    %45 = math.exp %44 : vector<2x8x16xf32>
    %cst_22 = arith.constant dense<0.000000e+00> : vector<2x8xf32>
    %46 = vector.multi_reduction <add>, %45, %cst_22 [2] : vector<2x8x16xf32> to vector<2x8xf32>
    %47 = vector.shape_cast %46 : vector<2x8xf32> to vector<2x8x1xf32>
    %48 = vector.broadcast %47 : vector<2x8x1xf32> to vector<2x8x16xf32>
    %49 = arith.divf %45, %48 : vector<2x8x16xf32>
    "tpu.trace_start"() <{level = 10 : i32, message = "bnm,bmd->bnd"}> : () -> ()
    %cst_23 = arith.constant dense<0.000000e+00> : vector<2x8x32xf32>
    %50 = tpu.matmul %49, %37, %cst_23 {dimension_numbers = #tpu.dot_dimension_numbers<[2], [1], [1], [2], [0, 0, 0, 1, 1, 2], [0], [0]>} : vector<2x8x16xf32>, vector<2x16x32xf32>, vector<2x8x32xf32> -> vector<2x8x32xf32>
    "tpu.trace_stop"() : () -> ()
    %51 = vector.extract_strided_slice %9 {offsets = [0, 0, 64], sizes = [2, 8, 32], strides = [1, 1, 1]} : vector<2x8x128xf32> to vector<2x8x32xf32>
    %52 = vector.extract_strided_slice %16 {offsets = [0, 0, 64], sizes = [2, 16, 32], strides = [1, 1, 1]} : vector<2x16x128xf32> to vector<2x16x32xf32>
    %53 = vector.extract_strided_slice %18 {offsets = [0, 0, 64], sizes = [2, 16, 32], strides = [1, 1, 1]} : vector<2x16x128xf32> to vector<2x16x32xf32>
    "tpu.trace_start"() <{level = 10 : i32, message = "bnd,bmd->bnm"}> : () -> ()
    %cst_24 = arith.constant dense<0.000000e+00> : vector<2x8x16xf32>
    %54 = tpu.matmul %51, %52, %cst_24 {dimension_numbers = #tpu.dot_dimension_numbers<[2], [2], [1], [1], [0, 0, 0, 1, 1, 1], [0], [0]>} : vector<2x8x32xf32>, vector<2x16x32xf32>, vector<2x8x16xf32> -> vector<2x8x16xf32>
    "tpu.trace_stop"() : () -> ()
    %cst_25 = arith.constant 0.0883883461 : f32
    %55 = vector.broadcast %cst_25 : f32 to vector<2x8x16xf32>
    %56 = arith.mulf %54, %55 : vector<2x8x16xf32>
    %cst_26 = arith.constant dense<0xFF800000> : vector<2x8xf32>
    %57 = vector.multi_reduction <maximumf>, %56, %cst_26 [2] : vector<2x8x16xf32> to vector<2x8xf32>
    %58 = vector.shape_cast %57 : vector<2x8xf32> to vector<2x8x1xf32>
    %59 = vector.broadcast %58 : vector<2x8x1xf32> to vector<2x8x16xf32>
    %60 = arith.subf %56, %59 : vector<2x8x16xf32>
    %61 = math.exp %60 : vector<2x8x16xf32>
    %cst_27 = arith.constant dense<0.000000e+00> : vector<2x8xf32>
    %62 = vector.multi_reduction <add>, %61, %cst_27 [2] : vector<2x8x16xf32> to vector<2x8xf32>
    %63 = vector.shape_cast %62 : vector<2x8xf32> to vector<2x8x1xf32>
    %64 = vector.broadcast %63 : vector<2x8x1xf32> to vector<2x8x16xf32>
    %65 = arith.divf %61, %64 : vector<2x8x16xf32>
    "tpu.trace_start"() <{level = 10 : i32, message = "bnm,bmd->bnd"}> : () -> ()
    %cst_28 = arith.constant dense<0.000000e+00> : vector<2x8x32xf32>
    %66 = tpu.matmul %65, %53, %cst_28 {dimension_numbers = #tpu.dot_dimension_numbers<[2], [1], [1], [2], [0, 0, 0, 1, 1, 2], [0], [0]>} : vector<2x8x16xf32>, vector<2x16x32xf32>, vector<2x8x32xf32> -> vector<2x8x32xf32>
    "tpu.trace_stop"() : () -> ()
    %67 = vector.extract_strided_slice %9 {offsets = [0, 0, 96], sizes = [2, 8, 32], strides = [1, 1, 1]} : vector<2x8x128xf32> to vector<2x8x32xf32>
    %68 = vector.extract_strided_slice %16 {offsets = [0, 0, 96], sizes = [2, 16, 32], strides = [1, 1, 1]} : vector<2x16x128xf32> to vector<2x16x32xf32>
    %69 = vector.extract_strided_slice %18 {offsets = [0, 0, 96], sizes = [2, 16, 32], strides = [1, 1, 1]} : vector<2x16x128xf32> to vector<2x16x32xf32>
    "tpu.trace_start"() <{level = 10 : i32, message = "bnd,bmd->bnm"}> : () -> ()
    %cst_29 = arith.constant dense<0.000000e+00> : vector<2x8x16xf32>
    %70 = tpu.matmul %67, %68, %cst_29 {dimension_numbers = #tpu.dot_dimension_numbers<[2], [2], [1], [1], [0, 0, 0, 1, 1, 1], [0], [0]>} : vector<2x8x32xf32>, vector<2x16x32xf32>, vector<2x8x16xf32> -> vector<2x8x16xf32>
    "tpu.trace_stop"() : () -> ()
    %cst_30 = arith.constant 0.0883883461 : f32
    %71 = vector.broadcast %cst_30 : f32 to vector<2x8x16xf32>
    %72 = arith.mulf %70, %71 : vector<2x8x16xf32>
    %cst_31 = arith.constant dense<0xFF800000> : vector<2x8xf32>
    %73 = vector.multi_reduction <maximumf>, %72, %cst_31 [2] : vector<2x8x16xf32> to vector<2x8xf32>
    %74 = vector.shape_cast %73 : vector<2x8xf32> to vector<2x8x1xf32>
    %75 = vector.broadcast %74 : vector<2x8x1xf32> to vector<2x8x16xf32>
    %76 = arith.subf %72, %75 : vector<2x8x16xf32>
    %77 = math.exp %76 : vector<2x8x16xf32>
    %cst_32 = arith.constant dense<0.000000e+00> : vector<2x8xf32>
    %78 = vector.multi_reduction <add>, %77, %cst_32 [2] : vector<2x8x16xf32> to vector<2x8xf32>
    %79 = vector.shape_cast %78 : vector<2x8xf32> to vector<2x8x1xf32>
    %80 = vector.broadcast %79 : vector<2x8x1xf32> to vector<2x8x16xf32>
    %81 = arith.divf %77, %80 : vector<2x8x16xf32>
    "tpu.trace_start"() <{level = 10 : i32, message = "bnm,bmd->bnd"}> : () -> ()
    %cst_33 = arith.constant dense<0.000000e+00> : vector<2x8x32xf32>
    %82 = tpu.matmul %81, %69, %cst_33 {dimension_numbers = #tpu.dot_dimension_numbers<[2], [1], [1], [2], [0, 0, 0, 1, 1, 2], [0], [0]>} : vector<2x8x16xf32>, vector<2x16x32xf32>, vector<2x8x32xf32> -> vector<2x8x32xf32>
    "tpu.trace_stop"() : () -> ()
    %83 = tpu.concatenate %34, %50, %66, %82 in 2 : vector<2x8x32xf32>, vector<2x8x32xf32>, vector<2x8x32xf32>, vector<2x8x32xf32> -> vector<2x8x128xf32>
    %84 = vector.shape_cast %83 : vector<2x8x128xf32> to vector<16x128xf32>
    %c0_34 = arith.constant 0 : index
    %c0_35 = arith.constant 0 : index
    %85 = vector.load %arg7[%c0_34, %c0_35] : memref<128x128xf32, #tpu.memory_space<vmem>>, vector<128x128xf32>
    %cst_36 = arith.constant dense<0.000000e+00> : vector<16x128xf32>
    %86 = tpu.matmul %84, %85, %cst_36 {dimension_numbers = #tpu.dot_dimension_numbers<[1], [0], [0], [1], [0, 0, 1, 1], [], []>} : vector<16x128xf32>, vector<128x128xf32>, vector<16x128xf32> -> vector<16x128xf32>
    %c0_37 = arith.constant 0 : index
    %c0_38 = arith.constant 0 : index
    %87 = vector.load %arg8[%c0_37, %c0_38] : memref<1x128xf32, #tpu.memory_space<vmem>>, vector<1x128xf32>
    %88 = vector.broadcast %87 : vector<1x128xf32> to vector<16x128xf32>
    %89 = arith.addf %86, %88 : vector<16x128xf32>
    %90 = arith.addf %1, %89 : vector<16x128xf32>
    %c0_39 = arith.constant 0 : index
    %c0_40 = arith.constant 0 : index
    %91 = vector.load %arg9[%c0_39, %c0_40] : memref<128x256xf32, #tpu.memory_space<vmem>>, vector<128x256xf32>
    %cst_41 = arith.constant dense<0.000000e+00> : vector<16x256xf32>
    %92 = tpu.matmul %90, %91, %cst_41 {dimension_numbers = #tpu.dot_dimension_numbers<[1], [0], [0], [1], [0, 0, 1, 1], [], []>} : vector<16x128xf32>, vector<128x256xf32>, vector<16x256xf32> -> vector<16x256xf32>
    %c0_42 = arith.constant 0 : index
    %c0_43 = arith.constant 0 : index
    %93 = vector.load %arg10[%c0_42, %c0_43] : memref<1x256xf32, #tpu.memory_space<vmem>>, vector<1x256xf32>
    %94 = vector.broadcast %93 : vector<1x256xf32> to vector<16x256xf32>
    %95 = arith.addf %92, %94 : vector<16x256xf32>
    %cst_44 = arith.constant 0.000000e+00 : f32
    %96 = vector.broadcast %cst_44 : f32 to vector<16x256xf32>
    %97 = arith.maximumf %95, %96 : vector<16x256xf32>
    %c0_45 = arith.constant 0 : index
    %c0_46 = arith.constant 0 : index
    %98 = vector.load %arg11[%c0_45, %c0_46] : memref<256x128xf32, #tpu.memory_space<vmem>>, vector<256x128xf32>
    %cst_47 = arith.constant dense<0.000000e+00> : vector<16x128xf32>
    %99 = tpu.matmul %97, %98, %cst_47 {dimension_numbers = #tpu.dot_dimension_numbers<[1], [0], [0], [1], [0, 0, 1, 1], [], []>} : vector<16x256xf32>, vector<256x128xf32>, vector<16x128xf32> -> vector<16x128xf32>
    %100 = arith.addf %90, %99 : vector<16x128xf32>
    %c0_48 = arith.constant 0 : index
    %c0_49 = arith.constant 0 : index
    %101 = vector.load %arg12[%c0_48, %c0_49] : memref<1x128xf32, #tpu.memory_space<vmem>>, vector<1x128xf32>
    %102 = vector.broadcast %101 : vector<1x128xf32> to vector<16x128xf32>
    %103 = arith.addf %100, %102 : vector<16x128xf32>
    %104 = vector.shape_cast %103 : vector<16x128xf32> to vector<2x8x128xf32>
    %c0_50 = arith.constant 0 : index
    %c0_51 = arith.constant 0 : index
    %c0_52 = arith.constant 0 : index
    %105 = vector.load %arg13[%c0_50, %c0_51, %c0_52] : memref<2x8x128xf32, #tpu.memory_space<vmem>>, vector<2x8x128xf32>
    tpu.vector_store %arg13[%c0_50, %c0_51, %c0_52], %104 {strides = array<i32>} : memref<2x8x128xf32, #tpu.memory_space<vmem>>, vector<2x8x128xf32>,
    return
  }
  func.func @transform_0(%arg0: i32) -> (i32, i32, i32) {
    %c0_i32 = arith.constant 0 : i32
    %c0_i32_0 = arith.constant 0 : i32
    %c0_i32_1 = arith.constant 0 : i32
    return %arg0, %c0_i32, %c0_i32_0 : i32, i32, i32
  }
  func.func @transform_1(%arg0: i32) -> (i32, i32, i32) {
    %c0_i32 = arith.constant 0 : i32
    %c0_i32_0 = arith.constant 0 : i32
    %c0_i32_1 = arith.constant 0 : i32
    return %arg0, %c0_i32, %c0_i32_0 : i32, i32, i32
  }
  func.func @transform_2(%arg0: i32) -> (i32, i32) {
    %c0_i32 = arith.constant 0 : i32
    %c0_i32_0 = arith.constant 0 : i32
    %c0_i32_1 = arith.constant 0 : i32
    return %c0_i32, %c0_i32_0 : i32, i32
  }
  func.func @transform_3(%arg0: i32) -> (i32, i32) {
    %c0_i32 = arith.constant 0 : i32
    %c0_i32_0 = arith.constant 0 : i32
    %c0_i32_1 = arith.constant 0 : i32
    return %c0_i32, %c0_i32_0 : i32, i32
  }
  func.func @transform_4(%arg0: i32) -> (i32, i32) {
    %c0_i32 = arith.constant 0 : i32
    %c0_i32_0 = arith.constant 0 : i32
    %c0_i32_1 = arith.constant 0 : i32
    return %c0_i32, %c0_i32_0 : i32, i32
  }
  func.func @transform_5(%arg0: i32) -> (i32, i32) {
    %c0_i32 = arith.constant 0 : i32
    %c0_i32_0 = arith.constant 0 : i32
    %c0_i32_1 = arith.constant 0 : i32
    return %c0_i32, %c0_i32_0 : i32, i32
  }
  func.func @transform_6(%arg0: i32) -> (i32, i32) {
    %c0_i32 = arith.constant 0 : i32
    %c0_i32_0 = arith.constant 0 : i32
    %c0_i32_1 = arith.constant 0 : i32
    return %c0_i32, %c0_i32_0 : i32, i32
  }
  func.func @transform_7(%arg0: i32) -> (i32, i32) {
    %c0_i32 = arith.constant 0 : i32
    %c0_i32_0 = arith.constant 0 : i32
    %c0_i32_1 = arith.constant 0 : i32
    return %c0_i32, %c0_i32_0 : i32, i32
  }
  func.func @transform_8(%arg0: i32) -> (i32, i32) {
    %c0_i32 = arith.constant 0 : i32
    %c0_i32_0 = arith.constant 0 : i32
    %c0_i32_1 = arith.constant 0 : i32
    return %c0_i32, %c0_i32_0 : i32, i32
  }
  func.func @transform_9(%arg0: i32) -> (i32, i32) {
    %c0_i32 = arith.constant 0 : i32
    %c0_i32_0 = arith.constant 0 : i32
    %c0_i32_1 = arith.constant 0 : i32
    return %c0_i32, %c0_i32_0 : i32, i32
  }
  func.func @transform_10(%arg0: i32) -> (i32, i32) {
    %c0_i32 = arith.constant 0 : i32
    %c0_i32_0 = arith.constant 0 : i32
    %c0_i32_1 = arith.constant 0 : i32
    return %c0_i32, %c0_i32_0 : i32, i32
  }
  func.func @transform_11(%arg0: i32) -> (i32, i32) {
    %c0_i32 = arith.constant 0 : i32
    %c0_i32_0 = arith.constant 0 : i32
    %c0_i32_1 = arith.constant 0 : i32
    return %c0_i32, %c0_i32_0 : i32, i32
  }
  func.func @transform_12(%arg0: i32) -> (i32, i32, i32) {
    %c0_i32 = arith.constant 0 : i32
    %c0_i32_0 = arith.constant 0 : i32
    %c0_i32_1 = arith.constant 0 : i32
    return %arg0, %c0_i32, %c0_i32_0 : i32, i32, i32
  }
}

</mosaic_0001>

<bundles_post_ra>
// kernel: tpu_custom_call.1
= control target key start
LH: loop header
LB: loop body
LE: loop exit
PB: predicated region body
PF: predicated region fallthrough
CT: control target
= control target key end

     0   :  { %17 = vsyncpa [#allocation3], 0  ;;  %s3428_s0 = inlined_call_operand.hbm [shape: f32[2,8,128], index: 0, kind: input, shape index: {}]   ;;  %s3429_s1 = inlined_call_operand.hbm [shape: f32[2,16,128], index: 1, kind: input, shape index: {}]   ;;  %s3430_s2 = inlined_call_operand.hbm [shape: f32[128,128], index: 2, kind: input, shape index: {}]   ;;  %s3431_s3 = inlined_call_operand.vmem [shape: f32[1,128], index: 3, kind: input, shape index: {}]   ;;  %s3432_s4 = inlined_call_operand.hbm [shape: f32[128,256], index: 4, kind: input, shape index: {}]   ;;  %s3433_s5 = inlined_call_operand.vmem [shape: f32[1,256], index: 5, kind: input, shape index: {}]   ;;  %s3434_s6 = inlined_call_operand.hbm [shape: f32[128,128], index: 6, kind: input, shape index: {}]   ;;  %s3435_s7 = inlined_call_operand.vmem [shape: f32[1,128], index: 7, kind: input, shape index: {}]   ;;  %s3436_s8 = inlined_call_operand.hbm [shape: f32[128,256], index: 8, kind: input, shape index: {}]   ;;  %s3437_s9 = inlined_call_operand.vmem [shape: f32[1,256], index: 9, kind: input, shape index: {}]   ;;  %s3438_s10 = inlined_call_operand.hbm [shape: f32[256,128], index: 10, kind: input, shape index: {}]   ;;  %s3439_s11 = inlined_call_operand.vmem [shape: f32[1,128], index: 11, kind: input, shape index: {}]   ;;  %s3440_s12 = inlined_call_operand.hbm [shape: f32[2,8,128], index: 12, kind: output, shape index: {}]  }
   0x1   :  { %18 = vsyncpa [#allocation6], 0 }
   0x2   :  { %19 = vsyncpa [#allocation9], 0 }
   0x3   :  { %20 = vsyncpa [#allocation12], 0 }
   0x4   :  { %21 = vsyncpa [#allocation4], 0  ;;  %s3011_s21 = smov [#allocation5]   ;;  %s3012_s23 = smov [#allocation8]  }
   0x5   :  { %s39_s22 = sshll.u32 %s3011_s21, 4  ;;  %s65_s24 = sshll.u32 %s3012_s23, 4  ;;  %s40_s22 = int_to_ptr.vmem [resolvable:$true] %s39_s22  ;;  %s3094_s24 = int_to_ptr.vmem [resolvable:$true] %s65_s24 }
   0x6   :  { %s2825_s27 = scalar_lea.hbm %s3429_s1, 512 }
   0x7   :  { %p2826_p0 = scmp.ne.s32.totalorder %s3429_s1, %s2825_s27  ;;  %p2829_p1 = scmp.lt.u32.totalorder %s2825_s27, %s3429_s1 }
   0x9   :  { %p2831_p2 = pnand %p2829_p1, %p2826_p0 }
   0xb   :  { %2834 = shalt.err (!%p2831_p2)
}
   0xc   :  { %s2835_s14 = scalar_lea.vmem %s40_s22, 512  ;;  %p2840_p4 = scmp.lt.s32.totalorder %s40_s22, %s40_s22 }
   0xd   :  { %p2836_p3 = scmp.ne.s32.totalorder %s40_s22, %s2835_s14  ;;  %p2841_p5 = scmp.lt.s32.totalorder %s2835_s14, %s2835_s14 }
   0xf   :  { %p2842_p6 = por %p2841_p5, %p2840_p4 }
  0x11   :  { %p2843_p7 = pnand %p2842_p6, %p2836_p3 }
  0x13   :  { %2846 = shalt.err (!%p2843_p7)
}
  0x14   :  { %s3013_s15 = smov 128   ;;  %s3014_s16 = smov 8  }
  0x15   :  { %45 = dma.hbm_to_vmem [thread:$0]  %s3429_s1, 512, %s40_s22, [#allocation6], %s3013_s15, %s3013_s15, %s3014_s16  }
  0x16   :  { %s2847_s21 = scalar_lea.hbm %s3432_s4, 4096 }
  0x17   :  { %p2848_p8 = scmp.ne.s32.totalorder %s3432_s4, %s2847_s21  ;;  %p2851_p9 = scmp.lt.u32.totalorder %s2847_s21, %s3432_s4 }
  0x19   :  { %p2853_p10 = pnand %p2851_p9, %p2848_p8 }
  0x1b   :  { %2856 = shalt.err (!%p2853_p10)
}
  0x1c   :  { %s2857_s28 = scalar_lea.vmem %s3094_s24, 4096  ;;  %p2862_p12 = scmp.lt.s32.totalorder %s3094_s24, %s3094_s24 }
  0x1d   :  { %p2858_p11 = scmp.ne.s32.totalorder %s3094_s24, %s2857_s28  ;;  %p2863_p13 = scmp.lt.s32.totalorder %s2857_s28, %s2857_s28 }
  0x1f   :  { %p2864_p0 = por %p2863_p13, %p2862_p12 }
  0x21   :  { %p2865_p1 = pnand %p2864_p0, %p2858_p11 }
  0x23   :  { %2868 = shalt.err (!%p2865_p1)
}
  0x24   :  { %s3015_s1 = smov 256   ;;  %s3016_s22 = smov 16  }
  0x25   :  { %71 = dma.hbm_to_vmem [thread:$0]  %s3432_s4, 4096, %s3094_s24, [#allocation9], %s3015_s1, %s3015_s1, %s3016_s22  }
  0x26   :  { %s3017_s13 = smov [#allocation11]   ;;  %s3018_s17 = smov [#allocation2]  }
  0x27   :  { %s93_s14 = sshll.u32 %s3017_s13, 4  ;;  %s27_s18 = sshll.u32 %s3018_s17, 4  ;;  %s94_s14 = int_to_ptr.vmem [resolvable:$true] %s93_s14  ;;  %s3128_s18 = int_to_ptr.vmem [resolvable:$true] %s27_s18 }
  0x28   :  { %s2869_s21 = scalar_lea.hbm %s3436_s8, 4096 }
  0x29   :  { %p2870_p2 = scmp.ne.s32.totalorder %s3436_s8, %s2869_s21  ;;  %p2873_p3 = scmp.lt.u32.totalorder %s2869_s21, %s3436_s8 }
  0x2b   :  { %p2875_p4 = pnand %p2873_p3, %p2870_p2 }
  0x2d   :  { %2878 = shalt.err (!%p2875_p4)
}
  0x2e   :  { %s2879_s4 = scalar_lea.vmem %s94_s14, 4096  ;;  %p2884_p6 = scmp.lt.s32.totalorder %s94_s14, %s94_s14 }
  0x2f   :  { %p2880_p5 = scmp.ne.s32.totalorder %s94_s14, %s2879_s4  ;;  %p2885_p7 = scmp.lt.s32.totalorder %s2879_s4, %s2879_s4 }
  0x31   :  { %p2886_p8 = por %p2885_p7, %p2884_p6 }
  0x33   :  { %p2887_p9 = pnand %p2886_p8, %p2880_p5 }
  0x35   :  { %2890 = shalt.err (!%p2887_p9)
}
  0x36   :  { %99 = dma.hbm_to_vmem [thread:$0]  %s3436_s8, 4096, %s94_s14, [#allocation12], %s3015_s1, %s3015_s1, %s3016_s22  }
  0x37   :  { %s2891_s13 = scalar_lea.hbm %s3428_s0, 256 }
  0x38   :  { %p2892_p10 = scmp.ne.s32.totalorder %s3428_s0, %s2891_s13  ;;  %p2895_p11 = scmp.lt.u32.totalorder %s2891_s13, %s3428_s0 }
  0x3a   :  { %p2897_p12 = pnand %p2895_p11, %p2892_p10 }
  0x3c   :  { %2900 = shalt.err (!%p2897_p12)
}
  0x3d   :  { %s2901_s23 = scalar_lea.vmem %s3128_s18, 256  ;;  %p2906_p0 = scmp.lt.s32.totalorder %s3128_s18, %s3128_s18 }
  0x3e   :  { %p2902_p13 = scmp.ne.s32.totalorder %s3128_s18, %s2901_s23  ;;  %p2907_p1 = scmp.lt.s32.totalorder %s2901_s23, %s2901_s23 }
  0x40   :  { %p2908_p2 = por %p2907_p1, %p2906_p0 }
  0x42   :  { %p2909_p3 = pnand %p2908_p2, %p2902_p13 }
  0x44   :  { %2912 = shalt.err (!%p2909_p3)
}
  0x45   :  { %33 = dma.hbm_to_vmem [thread:$0]  %s3428_s0, 256, %s3128_s18, [#allocation3], %s3013_s15, %s3013_s15, %s3014_s16  }
  0x46   :  { %s3019_s22 = smov [#allocation7]   ;;  %s3020_s25 = smov [#allocation10]  }
  0x47   :  { %s51_s14 = sshll.u32 %s3019_s22, 4  ;;  %s79_s26 = sshll.u32 %s3020_s25, 4  ;;  %s52_s14 = int_to_ptr.vmem [resolvable:$true] %s51_s14  ;;  %s3162_s26 = int_to_ptr.vmem [resolvable:$true] %s79_s26 }
  0x48   :  { %s2913_s24 = scalar_lea.hbm %s3430_s2, 2048 }
  0x49   :  { %p2914_p4 = scmp.ne.s32.totalorder %s3430_s2, %s2913_s24  ;;  %p2917_p5 = scmp.lt.u32.totalorder %s2913_s24, %s3430_s2 }
  0x4b   :  { %p2919_p6 = pnand %p2917_p5, %p2914_p4 }
  0x4d   :  { %2922 = shalt.err (!%p2919_p6)
}
  0x4e   :  { %s2923_s0 = scalar_lea.vmem %s52_s14, 2048  ;;  %p2928_p8 = scmp.lt.s32.totalorder %s52_s14, %s52_s14 }
  0x4f   :  { %p2924_p7 = scmp.ne.s32.totalorder %s52_s14, %s2923_s0  ;;  %p2929_p9 = scmp.lt.s32.totalorder %s2923_s0, %s2923_s0 }
  0x51   :  { %p2930_p10 = por %p2929_p9, %p2928_p8 }
  0x53   :  { %p2931_p11 = pnand %p2930_p10, %p2924_p7 }
  0x55   :  { %2934 = shalt.err (!%p2931_p11)
}
  0x56   :  { %57 = dma.hbm_to_vmem [thread:$0]  %s3430_s2, 2048, %s52_s14, [#allocation6], %s3013_s15, %s3013_s15, %s3014_s16  }
  0x57   :  { %s2935_s21 = scalar_lea.hbm %s3434_s6, 2048 }
  0x58   :  { %p2936_p12 = scmp.ne.s32.totalorder %s3434_s6, %s2935_s21  ;;  %p2939_p13 = scmp.lt.u32.totalorder %s2935_s21, %s3434_s6 }
  0x5a   :  { %p2941_p0 = pnand %p2939_p13, %p2936_p12 }
  0x5c   :  { %2944 = shalt.err (!%p2941_p0)
}
  0x5d   :  { %s2945_s25 = scalar_lea.vmem %s3162_s26, 2048  ;;  %p2950_p2 = scmp.lt.s32.totalorder %s3162_s26, %s3162_s26 }
  0x5e   :  { %p2946_p1 = scmp.ne.s32.totalorder %s3162_s26, %s2945_s25  ;;  %p2951_p3 = scmp.lt.s32.totalorder %s2945_s25, %s2945_s25 }
  0x60   :  { %p2952_p4 = por %p2951_p3, %p2950_p2 }
  0x62   :  { %p2953_p5 = pnand %p2952_p4, %p2946_p1 }
  0x64   :  { %2956 = shalt.err (!%p2953_p5)
}
  0x65   :  { %85 = dma.hbm_to_vmem [thread:$0]  %s3434_s6, 2048, %s3162_s26, [#allocation9], %s3013_s15, %s3013_s15, %s3014_s16  }
  0x66   :  { %s3021_s27 = smov [#allocation13]   ;;  %s2957_s29 = scalar_lea.hbm %s3438_s10, 4096 }
  0x67   :  { %s107_s4 = sshll.u32 %s3021_s27, 4  ;;  %p2958_p6 = scmp.ne.s32.totalorder %s3438_s10, %s2957_s29  ;;  %s108_s4 = int_to_ptr.vmem [resolvable:$true] %s107_s4 }
  0x68   :  { %p2961_p7 = scmp.lt.u32.totalorder %s2957_s29, %s3438_s10 }
  0x6a   :  { %p2963_p8 = pnand %p2961_p7, %p2958_p6 }
  0x6c   :  { %2966 = shalt.err (!%p2963_p8)
}
  0x6d   :  { %s2967_s17 = scalar_lea.vmem %s108_s4, 4096  ;;  %p2972_p10 = scmp.lt.s32.totalorder %s108_s4, %s108_s4 }
  0x6e   :  { %p2968_p9 = scmp.ne.s32.totalorder %s108_s4, %s2967_s17  ;;  %p2973_p11 = scmp.lt.s32.totalorder %s2967_s17, %s2967_s17 }
  0x70   :  { %p2974_p12 = por %p2973_p11, %p2972_p10 }
  0x72   :  { %p2975_p13 = pnand %p2974_p12, %p2968_p9 }
  0x74   :  { %2978 = shalt.err (!%p2975_p13)
}
  0x75   :  { %113 = dma.hbm_to_vmem [thread:$0]  %s3438_s10, 4096, %s108_s4, [#allocation12], %s3013_s15, %s3013_s15, %s3014_s16  }
  0x76   :  { %3001 = dma.done.wait [#allocation3], 256  }
  0x77   :  { %3002 = vsyncadd [#allocation3], 4294967040 }
  0x78   :  { %3003 = dma.done.wait [#allocation6], 2560  }
  0x79   :  { %3004 = vsyncadd [#allocation6], 4294964736 }
  0x7a   :  { %3005 = dma.done.wait [#allocation9], 6144  }
  0x7b   :  { %3006 = vsyncadd [#allocation9], 4294961152 }
  0x7c   :  { %3007 = dma.done.wait [#allocation12], 8192  }
  0x7d   :  { %3008 = vsyncadd [#allocation12], 4294959104  ;;  %v3022_v0 = vmov 0.0   ;;  %v242_v1 = vld [vmem:[#allocation8 + $0x8] sm:$0xff]  ;;  %v244_v2 = vld [vmem:[#allocation8 + $0x18] sm:$0xff]  ;;  %vm3024_vm0 = vmmov 0  }
  0x7e   :  { %349 = vmatprep.mubr.f32.mxu1 %v3022_v0  ;;  %v241_v3 = vld [vmem:[#allocation8] sm:$0xff]  ;;  %v2514_v4 = vpack.c.bf16 %v244_v2, %v242_v1  ;;  %v243_v5 = vld [vmem:[#allocation8 + $0x10] sm:$0xff]  ;;  %v246_v6 = vld [vmem:[#allocation8 + $0x28] sm:$0xff]  ;;  %vm374_vm1 = vcmask 261120   ;;  %vm535_vm3 = vcmask 130048   ;;  %s3026_s21 = smov 64  }
  0x7f   :  { %v248_v7 = vld [vmem:[#allocation8 + $0x38] sm:$0xff]  ;;  %v2516_v8 = vpack.c.bf16 %v243_v5, %v241_v3  ;;  %v245_v10 = vld [vmem:[#allocation8 + $0x20] sm:$0xff]  ;;  %v247_v11 = vld [vmem:[#allocation8 + $0x30] sm:$0xff]  ;;  %s3027_s23 = smov 32   ;;  %vm1772_vm4 = vcmask 523264   ;;  %vm1775_vm5 = vcmask 785408  }
  0x80   :  { %v2518_v9 = vpack.c.bf16 %v248_v7, %v246_v6  ;;  %v250_v12 = vld [vmem:[#allocation8 + $0x48] sm:$0xff]  ;;  %2515 = vmatprep.subr.bf16.mxu1 %v2514_v4  ;;  %v252_v13 = vld [vmem:[#allocation8 + $0x58] sm:$0xff]  ;;  %v2520_v14 = vpack.c.bf16 %v247_v11, %v245_v10  ;;  %v143_v15 = vld [vmem:[#allocation7] sm:$0xff]  ;;  %s3028_s2 = smov [#allocation14]  }
  0x81   :  { %2517 = vmatpush1.bf16.msra.mxu1 %v2516_v8  ;;  %v144_v16 = vld [vmem:[#allocation7 + $0x8] sm:$0xff]  ;;  %v2522_v17 = vpack.c.bf16 %v252_v13, %v250_v12  ;;  %v249_v18 = vld [vmem:[#allocation8 + $0x40] sm:$0xff]  ;;  %v251_v19 = vld [vmem:[#allocation8 + $0x50] sm:$0xff]  ;;  %s2128_s14 = sshll.u32 %s3028_s2, 4  ;;  %s2129_s14 = int_to_ptr.vmem [resolvable:$true] %s2128_s14 }
  0x82   :  { %2519 = vmatprep.subr.bf16.mxu1 %v2518_v9  ;;  %v2482_v20 = vpack.c.bf16 %v144_v16, %v143_v15  ;;  %v254_v21 = vld [vmem:[#allocation8 + $0x68] sm:$0xff]  ;;  %v256_v22 = vld [vmem:[#allocation8 + $0x78] sm:$0xff]  ;;  %v145_v23 = vld [vmem:[#allocation7 + $0x10] sm:$0xff]  ;;  %v2524_v26 = vpack.c.bf16 %v251_v19, %v249_v18  ;;  %v3023_v16 = vmov 0.0|0.0   ;;  %s2979_s27 = scalar_lea.vmem %s2129_s14, 256  ;;  %p2984_p1 = scmp.lt.s32.totalorder %s2129_s14, %s2129_s14 }
  0x83   :  { %v146_v24 = vld [vmem:[#allocation7 + $0x18] sm:$0xff]  ;;  %v147_v27 = vld [vmem:[#allocation7 + $0x20] sm:$0xff]  ;;  %v148_v28 = vld [vmem:[#allocation7 + $0x28] sm:$0xff]  ;;  %v2526_v29 = vpack.c.bf16 %v256_v22, %v254_v21  ;;  %p2980_p0 = scmp.ne.s32.totalorder %s2129_s14, %s2979_s27  ;;  %p2985_p2 = scmp.lt.s32.totalorder %s2979_s27, %s2979_s27 }
  0x84   :  { %2483 = vmatprep.subr.bf16.mxu0 %v2482_v20  ;;  %v2486_v25 = vpack.c.bf16 %v146_v24, %v145_v23  ;;  %v253_v30 = vld [vmem:[#allocation8 + $0x60] sm:$0xff]  ;;  %v255_v31 = vld [vmem:[#allocation8 + $0x70] sm:$0xff]  ;;  %v258_v32 = vld [vmem:[#allocation8 + $0x88] sm:$0xff]  ;;  %v2490_v33 = vpack.c.bf16 %v148_v28, %v147_v27 }
  0x85   :  { %2521 = vmatpush1.bf16.msra.mxu1 %v2520_v14  ;;  %2485 = vmatpush3.bf16.msra.mxu0 %v2482_v20  ;;  %v260_v34 = vld [vmem:[#allocation8 + $0x98] sm:$0xff]  ;;  %v149_v35 = vld [vmem:[#allocation7 + $0x30] sm:$0xff]  ;;  %v2528_v37 = vpack.c.bf16 %v255_v31, %v253_v30  ;;  %v257_v39 = vld [vmem:[#allocation8 + $0x80] sm:$0xff]  ;;  %p2986_p3 = por %p2985_p2, %p2984_p1 }
  0x86   :  { %2523 = vmatprep.subr.bf16.mxu1 %v2522_v17  ;;  %2487 = vmatprep.subr.bf16.mxu0 %v2486_v25  ;;  %v150_v36 = vld [vmem:[#allocation7 + $0x38] sm:$0xff]  ;;  %v2530_v38 = vpack.c.bf16 %v260_v34, %v258_v32  ;;  %v259_v40 = vld [vmem:[#allocation8 + $0x90] sm:$0xff]  ;;  %v262_v41 = vld [vmem:[#allocation8 + $0xa8] sm:$0xff]  ;;  %v275_v17 = vlaneseq }
  0x87   :  { %v2494_v42 = vpack.c.bf16 %v150_v36, %v149_v35  ;;  %v264_v43 = vld [vmem:[#allocation8 + $0xb8] sm:$0xff]  ;;  %v151_v44 = vld [vmem:[#allocation7 + $0x40] sm:$0xff]  ;;  %v152_v45 = vld [vmem:[#allocation7 + $0x48] sm:$0xff]  ;;  %v2532_v46 = vpack.c.bf16 %v259_v40, %v257_v39  ;;  %p2987_p4 = pnand %p2986_p3, %p2980_p0 }
  0x88   :  { %v261_v47 = vld [vmem:[#allocation8 + $0xa0] sm:$0xff]  ;;  %v2534_v48 = vpack.c.bf16 %v264_v43, %v262_v41  ;;  %v263_v49 = vld [vmem:[#allocation8 + $0xb0] sm:$0xff]  ;;  %v266_v50 = vld [vmem:[#allocation8 + $0xc8] sm:$0xff]  ;;  %v2498_v51 = vpack.c.bf16 %v152_v45, %v151_v44  ;;  %v3224_v18 = vshrl.u32 %v275_v17, 7 }
  0x89   :  { %2525 = vmatpush1.bf16.msra.mxu1 %v2524_v26  ;;  %2489 = vmatpush3.bf16.msra.mxu0 %v2486_v25  ;;  %v137_v52 = vld [vmem:[#allocation2] sm:$0xff]  ;;  %v268_v53 = vld [vmem:[#allocation8 + $0xd8] sm:$0xff]  ;;  %v2536_v56 = vpack.c.bf16 %v263_v49, %v261_v47  ;;  %v265_v58 = vld [vmem:[#allocation8 + $0xc0] sm:$0xff] }
  0x8a   :  { %2527 = vmatprep.subr.bf16.mxu1 %v2526_v29  ;;  %2491 = vmatprep.subr.bf16.mxu0 %v2490_v33  ;;  %v153_v54 = vld [vmem:[#allocation7 + $0x50] sm:$0xff]  ;;  %v154_v55 = vld [vmem:[#allocation7 + $0x58] sm:$0xff]  ;;  %v2538_v57 = vpack.c.bf16 %v268_v53, %v266_v50  ;;  %v270_v60 = vld [vmem:[#allocation8 + $0xe8] sm:$0xff]  ;;  %v277_v19 = vsub.s32 0, %v3224_v18  ;;  %v281_v21 = vsub.s32 1, %v3224_v18 }
  0x8b   :  { %2332 = vmatprep.mubr.f32.mxu0 %v137_v52  ;;  %v267_v59 = vld [vmem:[#allocation8 + $0xd0] sm:$0xff]  ;;  %v2502_v61 = vpack.c.bf16 %v154_v55, %v153_v54  ;;  %v272_v62 = vld [vmem:[#allocation8 + $0xf8] sm:$0xff]  ;;  %v155_v63 = vld [vmem:[#allocation7 + $0x60] sm:$0xff] }
  0x8c   :  { %v156_v1 = vld [vmem:[#allocation7 + $0x68] sm:$0xff]  ;;  %v2540_v2 = vpack.c.bf16 %v267_v59, %v265_v58  ;;  %v2542_v3 = vpack.c.bf16 %v272_v62, %v270_v60  ;;  %v269_v4 = vld [vmem:[#allocation8 + $0xe0] sm:$0xff]  ;;  %v271_v5 = vld [vmem:[#allocation8 + $0xf0] sm:$0xff] }
  0x8d   :  { %2529 = vmatpush1.bf16.msra.mxu1 %v2528_v37  ;;  %2493 = vmatpush3.bf16.msra.mxu0 %v2490_v33  ;;  %v2506_v6 = vpack.c.bf16 %v156_v1, %v155_v63  ;;  %v157_v7 = vld [vmem:[#allocation7 + $0x70] sm:$0xff]  ;;  %v158_v8 = vld [vmem:[#allocation7 + $0x78] sm:$0xff]  ;;  %v2544_v9 = vpack.c.bf16 %v271_v5, %v269_v4  ;;  %v139_v11 = vld [vmem:[#allocation5] sm:$0xff] }
  0x8e   :  { %2531 = vmatprep.subr.bf16.mxu1 %v2530_v38  ;;  %2495 = vmatprep.subr.bf16.mxu0 %v2494_v42  ;;  %v2510_v10 = vpack.c.bf16 %v158_v8, %v157_v7  ;;  %v140_v12 = vld [vmem:[#allocation5 + $0x8] sm:$0xff]  ;;  %v138_v13 = vld [vmem:[#allocation2 + $0x8] sm:$0xff]  ;;  %v141_v14 = vld [vmem:[#allocation5 + $0x10] sm:$0xff] }
  0x8f   :  { %v142_v15 = vld [vmem:[#allocation5 + $0x18] sm:$0xff]  ;;  %v273_v20 = vld [vmem:[%s3433_s5] sm:$0x3]  ;;  %vm3237_vm2 = vmpackc.low %vm374_vm1, %vm374_vm1 }
  0x90   :  { %v278_v23 = vrot.slane %v273_v20, %v277_v19  ;;  %v282_v25 = vrot.slane %v273_v20, %v281_v21  ;;  %v2143_v41 = vld [vmem:[%s3431_s3] ss:$0 sm:$0xff]  ;;  %s3025_s3 = smov 96  }
  0x91   :  { %2533 = vmatpush1.bf16.msra.mxu1 %v2532_v46  ;;  %2497 = vmatpush3.bf16.msra.mxu0 %v2494_v42 }
  0x92   :  { %2535 = vmatprep.subr.bf16.mxu1 %v2534_v48  ;;  %2499 = vmatprep.subr.bf16.mxu0 %v2498_v51 }
  0x95   :  { %2537 = vmatpush1.bf16.msra.mxu1 %v2536_v56  ;;  %2501 = vmatpush3.bf16.msra.mxu0 %v2498_v51 }
  0x96   :  { %2539 = vmatprep.subr.bf16.mxu1 %v2538_v57  ;;  %2503 = vmatprep.subr.bf16.mxu0 %v2502_v61 }
  0x99   :  { %2541 = vmatpush1.bf16.msra.mxu1 %v2540_v2  ;;  %2505 = vmatpush3.bf16.msra.mxu0 %v2502_v61 }
  0x9a   :  { %2543 = vmatprep.subr.bf16.mxu1 %v2542_v3  ;;  %2507 = vmatprep.subr.bf16.mxu0 %v2506_v6 }
  0x9d   :  { %2545 = vmatpush1.bf16.msra.mxu1 %v2544_v9  ;;  %2509 = vmatpush3.bf16.msra.mxu0 %v2506_v6 }
  0x9e   :  { %2511 = vmatprep.subr.bf16.mxu0 %v2510_v10  ;;  %2560 = vmatprep.subr.bf16.mxu1 %v3023_v16 }
  0xa0   :  { %350 = vmatmul.mubr.f32.vlgmr.msra.gmra.mrb[0].mxu1 %v139_v11 }
  0xa1   :  { %355 = vmatprep.mubr.f32.mxu1 %v3022_v0  ;;  %2513 = vmatpush3.bf16.msra.mxu0 %v2510_v10 }
  0xa2   :  { %2546 = vmatprep.subr.bf16.mxu0 %v3023_v16 }
  0xa4   :  { %356 = vmatmul.mubr.f32.gmra.mrb[2].mxu1 %v140_v12  ;;  %2333 = vmatmul.mubr.f32.vlgmr.msra.gmra.mrb[0].mxu0 %v138_v13 }
  0xa5   :  { %361 = vmatprep.mubr.f32.mxu1 %v3022_v0  ;;  %2339 = vmatprep.mubr.msk.f32.mxu0 %vm3024_vm0, %v3022_v0 }
  0xa8   :  { %362 = vmatmul.mubr.f32.gmra.mrb[4].mxu1 %v141_v14 }
  0xa9   :  { %367 = vmatprep.mubr.f32.mxu1 %v3022_v0 }
  0xac   :  { %368 = vmatmul.mubr.f32.gmra.mrb[6].mxu1 %v142_v15 }
  0xad   :  { %2367 = vmatprep.mubr.msk.f32.mxu1 %vm3024_vm0, %v3022_v0 }
 0x173   :  { %v351_v22 = vpop.f32.mrb[0].mxu1 }
 0x174   :  { %v353_v24 = vpop.f32.mrb[1].mxu1  ;;  %v352_v28 = vadd.f32 %v351_v22, %v278_v23 }
 0x175   :  { %v354_v32 = vadd.f32 %v353_v24, %v282_v25 }
 0x177   :  { %v357_v26 = vpop.f32.mrb[2].mxu1  ;;  %v2334_v27 = vpop.f32.mrb[0].mxu0 }
 0x178   :  { %v358_v29 = vadd.f32 %v357_v26, %v278_v23  ;;  %v359_v30 = vpop.f32.mrb[3].mxu1  ;;  %v232_v31 = vpop.f32.mrb[1].mxu0  ;;  %v3264_v53 = vadd.f32 %v2334_v27, %v2143_v41 }
 0x179   :  { %v360_v33 = vadd.f32 %v359_v30, %v282_v25  ;;  %v3251_v43 = vadd.f32 %v2143_v41, %v232_v31 }
 0x17a   :  { %v2547_v35 = vpack.c.bf16 %v358_v29, %v352_v28  ;;  %v3241_v36 = vpack.i.bf16 %v358_v29, %v352_v28 }
 0x17b   :  { %v363_v37 = vpop.f32.mrb[4].mxu1  ;;  %v2555_v38 = vpack.c.bf16 %v360_v33, %v354_v32  ;;  %v3243_v39 = vpack.i.bf16 %v360_v33, %v354_v32 }
 0x17c   :  { %v365_v40 = vpop.f32.mrb[5].mxu1  ;;  %2549 = vmatpush3.bf16.xpose.msk.msra.mxu0 %vm3237_vm2, %v2547_v35  ;;  %v364_v45 = vadd.f32 %v363_v37, %v278_v23 }
 0x17d   :  { %v366_v42 = vadd.f32 %v365_v40, %v282_v25  ;;  %2550 = vmatprep.subr.bf16.mxu0 %v3023_v16 }
 0x17f   :  { %v369_v44 = vpop.f32.mrb[6].mxu1 }
 0x180   :  { %v370_v46 = vadd.f32 %v369_v44, %v278_v23  ;;  %v371_v47 = vpop.f32.mrb[7].mxu1 }
 0x181   :  { %v372_v48 = vadd.f32 %v371_v47, %v282_v25 }
 0x182   :  { %v2551_v49 = vpack.c.bf16 %v370_v46, %v364_v45  ;;  %v3253_v50 = vpack.i.bf16 %v370_v46, %v364_v45 }
 0x183   :  { %2340 = vmatmul.mubr.msk.f32.vlgmr.msra.gmra.mrb[2].mxu0 %vm374_vm1, %v3251_v43  ;;  %v2558_v51 = vpack.c.bf16 %v372_v48, %v366_v42  ;;  %v3257_v52 = vpack.i.bf16 %v372_v48, %v366_v42 }
 0x184   :  { %2553 = vmatpush3.bf16.xpose.msk.msra.mxu0 %vm3237_vm2, %v2551_v49  ;;  %2346 = vmatprep.mubr.msk.f32.mxu0 %vm3024_vm0, %v3022_v0 }
 0x185   :  { %2554 = vmatprep.subr.bf16.mxu0 %v3023_v16 }
 0x18b   :  { %2347 = vmatmul.mubr.msk.f32.vlgmr.msra.gmra.mrb[4].mxu0 %vm374_vm1, %v3264_v53 }
 0x18c   :  { %2556 = vmatpush3.bf16.msra.mxu0 %v2555_v38  ;;  %2353 = vmatprep.mubr.msk.f32.mxu0 %vm3024_vm0, %v3022_v0 }
 0x18d   :  { %2557 = vmatprep.subr.bf16.mxu0 %v3023_v16 }
 0x256   :  { %v450_v54 = vpop.f32.mrb[2].mxu0 }
 0x257   :  { %v533_v55 = vmul.f32 0.088388346, %v450_v54  ;;  %v2341_v56 = vpop.f32.mrb[3].mxu0 }
 0x259   :  { %v536_v57 = vsel %vm535_vm3, %v533_v55, -inf }
 0x25a   :  { %537 = vmax.xlane.f32.xlu0 %v536_v57 }
 0x25e   :  { %v529_v58 = vpop.f32.mrb[4].mxu0 }
 0x25f   :  { %v534_v59 = vmul.f32 0.088388346, %v529_v58  ;;  %v2348_v60 = vpop.f32.mrb[5].mxu0 }
 0x261   :  { %v539_v61 = vsel %vm535_vm3, %v534_v59, -inf }
 0x262   :  { %540 = vmax.xlane.f32.xlu0 %v539_v61 }
 0x278   :  { %2717 = vrot.lane.b32.xlu0 %v3253_v50, %s3025_s3 }
 0x2e7   :  { %v538_v62 = vpop.xlane.xlu0 %537 }
 0x2e8   :  { %v542_v63 = vsub.f32 %v533_v55, %v538_v62 }
 0x2ea   :  { %v544_v1 = vmul.f32 1.442695, %v542_v63 }
 0x2ec   :  { %2791 = vpow2.f32 %v544_v1 }
 0x2ef   :  { %v541_v2 = vpop.xlane.xlu0 %540 }
 0x2f0   :  { %v543_v3 = vsub.f32 %v534_v59, %v541_v2 }
 0x2f2   :  { %v546_v4 = vmul.f32 1.442695, %v543_v3 }
 0x2f3   :  { %v2718_v13 = vpop.permute.xlu0 %2717 }
 0x2f4   :  { %2793 = vpow2.f32 %v546_v4  ;;  %v2720_v14 = vunpack.i.h.bf16 %v2718_v13  ;;  %v2719_v15 = vunpack.i.l.bf16 %v2718_v13 }
 0x2f6   :  { %v2792_v5 = vpop.eup %2791  ;;  %v2565_v22 = vpack.c.bf16 %v2720_v14, %v2719_v15 }
 0x2f7   :  { %v548_v6 = vsel %vm535_vm3, %v2792_v5, 0.0 }
 0x2f8   :  { %549 = vadd.xlane.f32.xlu1 %v548_v6 }
 0x2fe   :  { %v2794_v7 = vpop.eup %2793 }
 0x2ff   :  { %v551_v8 = vsel %vm535_vm3, %v2794_v7, 0.0 }
 0x300   :  { %552 = vadd.xlane.f32.xlu1 %v551_v8 }
 0x311   :  { %786 = vrot.lane.b32.xlu1 %v3264_v53, %s3025_s3 }
 0x385   :  { %v550_v9 = vpop.xlane.xlu1 %549 }
 0x386   :  { %2795 = vrcp.f32 %v550_v9 }
 0x38d   :  { %v553_v10 = vpop.xlane.xlu1 %552 }
 0x38e   :  { %2797 = vrcp.f32 %v553_v10 }
 0x390   :  { %v2796_v11 = vpop.eup %2795 }
 0x391   :  { %v555_v12 = vmul.f32 %v2796_v11, %v2792_v5  ;;  %v787_v23 = vpop.permute.xlu1 %786 }
 0x393   :  { %2354 = vmatmul.mubr.msk.f32.vlgmr.msra.gmra.mrb[6].mxu0 %vm535_vm3, %v555_v12 }
 0x394   :  { %2559 = vmatpush3.bf16.msra.mxu0 %v2558_v51  ;;  %2360 = vmatprep.mubr.msk.f32.mxu0 %vm3024_vm0, %v3022_v0 }
 0x395   :  { %2564 = vmatprep.subr.bf16.mxu0 %v3023_v16 }
 0x398   :  { %v2798_v17 = vpop.eup %2797 }
 0x399   :  { %v557_v20 = vmul.f32 %v2798_v17, %v2794_v7 }
 0x39b   :  { %2361 = vmatmul.mubr.msk.f32.vlgmr.msra.gmra.mrb[8].mxu0 %vm535_vm3, %v557_v20 }
 0x39c   :  { %2374 = vmatprep.mubr.msk.f32.mxu0 %vm3024_vm0, %v3022_v0 }
 0x39d   :  { %2567 = vmatpush3.bf16.xpose.msk.msra.mxu0 %vm3237_vm2, %v2565_v22 }
 0x39e   :  { %2571 = vmatprep.subr.bf16.mxu0 %v3023_v16 }
 0x3a4   :  { %2375 = vmatmul.mubr.msk.f32.vlgmr.msra.gmra.mrb[10].mxu0 %vm374_vm1, %v787_v23 }
 0x3a5   :  { %2388 = vmatprep.mubr.msk.f32.mxu0 %vm3024_vm0, %v3022_v0 }
 0x466   :  { %v3292_v24 = vpop.f32.mrb[6].mxu0 }
 0x467   :  { %v2355_v25 = vpop.f32.mrb[7].mxu0 }
 0x46e   :  { %v3294_v26 = vpop.f32.mrb[8].mxu0 }
 0x46f   :  { %v2362_v27 = vpop.f32.mrb[9].mxu0 }
 0x477   :  { %v864_v28 = vpop.f32.mrb[10].mxu0 }
 0x478   :  { %v869_v29 = vmul.f32 0.088388346, %v864_v28  ;;  %v2376_v30 = vpop.f32.mrb[11].mxu0 }
 0x47a   :  { %v873_v31 = vsel %vm535_vm3, %v869_v29, -inf }
 0x47b   :  { %874 = vmax.xlane.f32.xlu1 %v873_v31 }
 0x48c   :  { %2727 = vrot.lane.b32.xlu1 %v3241_v36, %s3025_s3 }
 0x490   :  { %2732 = vrot.lane.b32.xlu1 %v3241_v36, %s3026_s21 }
 0x494   :  { %704 = vrot.lane.b32.xlu1 %v3251_v43, %s3025_s3 }
 0x498   :  { %1054 = vrot.lane.b32.xlu1 %v3251_v43, %s3026_s21 }
 0x508   :  { %v875_v32 = vpop.xlane.xlu1 %874 }
 0x509   :  { %v877_v33 = vsub.f32 %v869_v29, %v875_v32 }
 0x50b   :  { %v880_v35 = vmul.f32 1.442695, %v877_v33 }
 0x50c   :  { %v2728_v37 = vpop.permute.xlu1 %2727 }
 0x50d   :  { %2799 = vpow2.f32 %v880_v35  ;;  %v2730_v38 = vunpack.i.h.bf16 %v2728_v37  ;;  %v2729_v40 = vunpack.i.l.bf16 %v2728_v37 }
 0x50f   :  { %v2561_v41 = vpack.c.bf16 %v2730_v38, %v2729_v40 }
 0x510   :  { %v2733_v42 = vpop.permute.xlu1 %2732 }
 0x511   :  { %2563 = vmatpush3.bf16.xpose.msk.msra.mxu1 %vm3237_vm2, %v2561_v41  ;;  %v2735_v56 = vunpack.i.h.bf16 %v2733_v42  ;;  %v2734_v57 = vunpack.i.l.bf16 %v2733_v42 }
 0x512   :  { %2568 = vmatprep.subr.bf16.mxu1 %v3023_v16 }
 0x513   :  { %v2575_v59 = vpack.c.bf16 %v2735_v56, %v2734_v57 }
 0x514   :  { %v705_v45 = vpop.permute.xlu1 %704 }
 0x517   :  { %v2800_v44 = vpop.eup %2799 }
 0x518   :  { %2368 = vmatmul.mubr.msk.f32.vlgmr.msra.gmra.mrb[8].mxu1 %vm374_vm1, %v705_v45  ;;  %v885_v46 = vsel %vm535_vm3, %v2800_v44, 0.0  ;;  %v1055_v63 = vpop.permute.xlu1 %1054 }
 0x519   :  { %886 = vadd.xlane.f32.xlu0 %v885_v46  ;;  %2381 = vmatprep.mubr.msk.f32.mxu1 %vm3024_vm0, %v3022_v0 }
 0x52f   :  { %2722 = vrot.lane.b32.xlu0 %v3257_v52, %s3025_s3 }
 0x533   :  { %2737 = vrot.lane.b32.xlu0 %v3253_v50, %s3026_s21 }
 0x537   :  { %1136 = vrot.lane.b32.xlu0 %v3264_v53, %s3026_s21 }
 0x5a6   :  { %v887_v47 = vpop.xlane.xlu0 %886 }
 0x5a7   :  { %2801 = vrcp.f32 %v887_v47 }
 0x5aa   :  { %v2723_v48 = vpop.permute.xlu0 %2722 }
 0x5ab   :  { %v2725_v49 = vunpack.i.h.bf16 %v2723_v48  ;;  %v2724_v51 = vunpack.i.l.bf16 %v2723_v48 }
 0x5ad   :  { %v2572_v54 = vpack.c.bf16 %v2725_v49, %v2724_v51 }
 0x5ae   :  { %v2738_v60 = vpop.permute.xlu0 %2737 }
 0x5af   :  { %2573 = vmatpush3.bf16.msra.mxu0 %v2572_v54  ;;  %v2740_v61 = vunpack.i.h.bf16 %v2738_v60  ;;  %v2739_v62 = vunpack.i.l.bf16 %v2738_v60 }
 0x5b0   :  { %2574 = vmatprep.subr.bf16.mxu0 %v3023_v16 }
 0x5b1   :  { %v2802_v55 = vpop.eup %2801  ;;  %v2579_v1 = vpack.c.bf16 %v2740_v61, %v2739_v62 }
 0x5b2   :  { %v891_v58 = vmul.f32 %v2802_v55, %v2800_v44  ;;  %v1137_v2 = vpop.permute.xlu0 %1136 }
 0x5b4   :  { %2389 = vmatmul.mubr.msk.f32.vlgmr.msra.gmra.mrb[12].mxu0 %vm535_vm3, %v891_v58 }
 0x5b5   :  { %2395 = vmatprep.mubr.msk.f32.mxu0 %vm3024_vm0, %v3022_v0 }
 0x5b8   :  { %2577 = vmatpush3.bf16.xpose.msk.msra.mxu0 %vm3237_vm2, %v2575_v59 }
 0x5b9   :  { %2578 = vmatprep.subr.bf16.mxu0 %v3023_v16 }
 0x5bf   :  { %2396 = vmatmul.mubr.msk.f32.vlgmr.msra.gmra.mrb[14].mxu0 %vm374_vm1, %v1055_v63 }
 0x5c0   :  { %2581 = vmatpush3.bf16.xpose.msk.msra.mxu0 %vm3237_vm2, %v2579_v1  ;;  %2402 = vmatprep.mubr.msk.f32.mxu0 %vm3024_vm0, %v3022_v0 }
 0x5c1   :  { %2585 = vmatprep.subr.bf16.mxu0 %v3023_v16 }
 0x5c7   :  { %2403 = vmatmul.mubr.msk.f32.vlgmr.msra.gmra.mrb[16].mxu0 %vm374_vm1, %v1137_v2 }
 0x5c8   :  { %2416 = vmatprep.mubr.msk.f32.mxu0 %vm3024_vm0, %v3022_v0 }
 0x5eb   :  { %v782_v3 = vpop.f32.mrb[8].mxu1 }
 0x5ec   :  { %v868_v4 = vmul.f32 0.088388346, %v782_v3  ;;  %v2369_v5 = vpop.f32.mrb[9].mxu1 }
 0x5ee   :  { %v870_v6 = vsel %vm535_vm3, %v868_v4, -inf }
 0x5ef   :  { %871 = vmax.xlane.f32.xlu1 %v870_v6 }
 0x600   :  { %2742 = vrot.lane.b32.xlu1 %v3243_v39, %s3025_s3 }
 0x67c   :  { %v872_v7 = vpop.xlane.xlu1 %871 }
 0x67d   :  { %v876_v14 = vsub.f32 %v868_v4, %v872_v7 }
 0x67f   :  { %v878_v15 = vmul.f32 1.442695, %v876_v14 }
 0x680   :  { %v2743_v8 = vpop.permute.xlu1 %2742 }
 0x681   :  { %v2745_v9 = vunpack.i.h.bf16 %v2743_v8  ;;  %v2744_v10 = vunpack.i.l.bf16 %v2743_v8  ;;  %2803 = vpow2.f32 %v878_v15 }
 0x683   :  { %v2569_v11 = vpack.c.bf16 %v2745_v9, %v2744_v10 }
 0x685   :  { %2570 = vmatpush3.bf16.msra.mxu1 %v2569_v11 }
 0x686   :  { %2582 = vmatprep.subr.bf16.mxu1 %v3023_v16 }
 0x687   :  { %v3338_v12 = vpop.f32.mrb[12].mxu0 }
 0x688   :  { %v2390_v13 = vpop.f32.mrb[13].mxu0 }
 0x68b   :  { %v2804_v30 = vpop.eup %2803 }
 0x68c   :  { %v882_v31 = vsel %vm535_vm3, %v2804_v30, 0.0 }
 0x692   :  { %v1132_v17 = vpop.f32.mrb[14].mxu0 }
 0x693   :  { %v1218_v20 = vmul.f32 0.088388346, %v1132_v17  ;;  %v2397_v22 = vpop.f32.mrb[15].mxu0 }
 0x695   :  { %v1220_v23 = vsel %vm535_vm3, %v1218_v20, -inf }
 0x696   :  { %1221 = vmax.xlane.f32.xlu0 %v1220_v23 }
 0x69a   :  { %v1214_v25 = vpop.f32.mrb[16].mxu0 }
 0x69b   :  { %v1219_v27 = vmul.f32 0.088388346, %v1214_v25  ;;  %v2404_v28 = vpop.f32.mrb[17].mxu0 }
 0x69d   :  { %v1223_v29 = vsel %vm535_vm3, %v1219_v27, -inf }
 0x69e   :  { %1224 = vmax.xlane.f32.xlu0 %v1223_v29 }
 0x6a2   :  { %883 = vadd.xlane.f32.xlu0 %v882_v31 }
 0x723   :  { %v1222_v32 = vpop.xlane.xlu0 %1221 }
 0x724   :  { %v1226_v33 = vsub.f32 %v1218_v20, %v1222_v32 }
 0x726   :  { %v1228_v35 = vmul.f32 1.442695, %v1226_v33 }
 0x728   :  { %2805 = vpow2.f32 %v1228_v35 }
 0x72b   :  { %v1225_v37 = vpop.xlane.xlu0 %1224 }
 0x72c   :  { %v1227_v38 = vsub.f32 %v1219_v27, %v1225_v37 }
 0x72e   :  { %v1230_v40 = vmul.f32 1.442695, %v1227_v38 }
 0x72f   :  { %v884_v41 = vpop.xlane.xlu0 %883 }
 0x730   :  { %2807 = vpow2.f32 %v1230_v40 }
 0x731   :  { %2809 = vrcp.f32 %v884_v41 }
 0x732   :  { %v2806_v42 = vpop.eup %2805 }
 0x733   :  { %v1232_v44 = vsel %vm535_vm3, %v2806_v42, 0.0 }
 0x734   :  { %1233 = vadd.xlane.f32.xlu1 %v1232_v44 }
 0x73a   :  { %v2808_v45 = vpop.eup %2807 }
 0x73b   :  { %v2810_v46 = vpop.eup %2809  ;;  %v1235_v47 = vsel %vm535_vm3, %v2808_v45, 0.0 }
 0x73c   :  { %v889_v48 = vmul.f32 %v2810_v46, %v2804_v30  ;;  %1236 = vadd.xlane.f32.xlu0 %v1235_v47 }
 0x73e   :  { %2382 = vmatmul.mubr.msk.f32.vlgmr.msra.gmra.mrb[10].mxu1 %vm535_vm3, %v889_v48 }
 0x73f   :  { %2409 = vmatprep.mubr.msk.f32.mxu1 %vm3024_vm0, %v3022_v0 }
 0x745   :  { %2752 = vrot.lane.b32.xlu1 %v3257_v52, %s3026_s21 }
 0x749   :  { %2757 = vrot.lane.b32.xlu1 %v3241_v36, %s3027_s23 }
 0x74d   :  { %2762 = vrot.lane.b32.xlu1 %v3253_v50, %s3027_s23 }
 0x751   :  { %1482 = vrot.lane.b32.xlu1 %v3264_v53, %s3027_s23 }
 0x752   :  { %2747 = vrot.lane.b32.xlu0 %v3243_v39, %s3026_s21 }
 0x756   :  { %1400 = vrot.lane.b32.xlu0 %v3251_v43, %s3027_s23 }
 0x7c1   :  { %v1234_v49 = vpop.xlane.xlu1 %1233 }
 0x7c2   :  { %2811 = vrcp.f32 %v1234_v49 }
 0x7c5   :  { %v2753_v51 = vpop.permute.xlu1 %2752 }
 0x7c6   :  { %v2755_v54 = vunpack.i.h.bf16 %v2753_v51  ;;  %v2754_v55 = vunpack.i.l.bf16 %v2753_v51 }
 0x7c8   :  { %v2586_v56 = vpack.c.bf16 %v2755_v54, %v2754_v55 }
 0x7c9   :  { %v2758_v57 = vpop.permute.xlu1 %2757  ;;  %v1237_v36 = vpop.xlane.xlu0 %1236 }
 0x7ca   :  { %2813 = vrcp.f32 %v1237_v36  ;;  %2587 = vmatpush3.bf16.msra.mxu0 %v2586_v56  ;;  %v2760_v2 = vunpack.i.h.bf16 %v2758_v57  ;;  %v2759_v3 = vunpack.i.l.bf16 %v2758_v57 }
 0x7cb   :  { %2592 = vmatprep.subr.bf16.mxu0 %v3023_v16 }
 0x7cc   :  { %v2812_v60 = vpop.eup %2811  ;;  %v2589_v6 = vpack.c.bf16 %v2760_v2, %v2759_v3  ;;  %v1786_v3 = vld [vmem:[#allocation10 + $0x40] sm:$0xff] }
 0x7cd   :  { %v2748_v50 = vpop.permute.xlu0 %2747  ;;  %v2763_v59 = vpop.permute.xlu1 %2762  ;;  %v1239_v63 = vmul.f32 %v2812_v60, %v2806_v42 }
 0x7ce   :  { %v2750_v53 = vunpack.i.h.bf16 %v2748_v50  ;;  %v2749_v58 = vunpack.i.l.bf16 %v2748_v50  ;;  %v2765_v62 = vunpack.i.h.bf16 %v2763_v59  ;;  %v2764_v43 = vunpack.i.l.bf16 %v2763_v59  ;;  %v1779_v50 = vld [vmem:[#allocation10 + $0x8] sm:$0xff]  ;;  %v1781_v59 = vld [vmem:[#allocation10 + $0x18] sm:$0xff] }
 0x7d0   :  { %v2583_v61 = vpack.c.bf16 %v2750_v53, %v2749_v58  ;;  %v2593_v5 = vpack.c.bf16 %v2765_v62, %v2764_v43  ;;  %v1780_v53 = vld [vmem:[#allocation10 + $0x10] sm:$0xff]  ;;  %v1783_v62 = vld [vmem:[#allocation10 + $0x28] sm:$0xff] }
 0x7d1   :  { %v1483_v7 = vpop.permute.xlu1 %1482  ;;  %v1401_v8 = vpop.permute.xlu0 %1400  ;;  %v2606_v60 = vpack.c.bf16 %v1781_v59, %v1780_v53  ;;  %v1898_v59 = vld [vmem:[#allocation11 + $0xa0] sm:$0xff] }
 0x7d2   :  { %2584 = vmatpush3.bf16.msra.mxu1 %v2583_v61  ;;  %v1782_v61 = vld [vmem:[#allocation10 + $0x20] sm:$0xff] }
 0x7d3   :  { %2588 = vmatprep.subr.bf16.mxu1 %v3023_v16  ;;  %v2610_v43 = vpack.c.bf16 %v1783_v62, %v1782_v61  ;;  %v1903_v61 = vld [vmem:[#allocation11 + $0xc8] sm:$0xff]  ;;  %v1905_v62 = vld [vmem:[#allocation11 + $0xd8] sm:$0xff] }
 0x7d4   :  { %v2814_v1 = vpop.eup %2813 }
 0x7d5   :  { %v1241_v4 = vmul.f32 %v2814_v1, %v2808_v45  ;;  %2410 = vmatmul.mubr.msk.f32.vlgmr.msra.gmra.mrb[12].mxu1 %vm535_vm3, %v1239_v63  ;;  %v1784_v63 = vld [vmem:[#allocation10 + $0x30] sm:$0xff]  ;;  %v1785_v1 = vld [vmem:[#allocation10 + $0x38] sm:$0xff] }
 0x7d6   :  { %2423 = vmatprep.mubr.msk.f32.mxu1 %vm3024_vm0, %v3022_v0  ;;  %v2614_v2 = vpack.c.bf16 %v1785_v1, %v1784_v63  ;;  %v2658_v63 = vpack.c.bf16 %v1905_v62, %v1903_v61  ;;  %v1902_v1 = vld [vmem:[#allocation11 + $0xc0] sm:$0xff]  ;;  %v2013_v62 = vld [vmem:[#allocation13 + $0x50] sm:$0xff] }
 0x7d7   :  { %2417 = vmatmul.mubr.msk.f32.vlgmr.msra.gmra.mrb[18].mxu0 %vm535_vm3, %v1241_v4  ;;  %v1787_v4 = vld [vmem:[#allocation10 + $0x48] sm:$0xff] }
 0x7d8   :  { %2595 = vmatpush3.bf16.xpose.msk.msra.mxu0 %vm3237_vm2, %v2593_v5  ;;  %2430 = vmatprep.mubr.msk.f32.mxu0 %vm3024_vm0, %v3022_v0  ;;  %v2618_v5 = vpack.c.bf16 %v1787_v4, %v1786_v3 }
 0x7d9   :  { %2599 = vmatprep.subr.bf16.mxu0 %v3023_v16 }
 0x7db   :  { %2591 = vmatpush3.bf16.xpose.msk.msra.mxu1 %vm3237_vm2, %v2589_v6  ;;  %v1788_v6 = vld [vmem:[#allocation10 + $0x50] sm:$0xff] }
 0x7dc   :  { %2596 = vmatprep.subr.bf16.mxu1 %v3023_v16 }
 0x7df   :  { %2431 = vmatmul.mubr.msk.f32.vlgmr.msra.gmra.mrb[20].mxu0 %vm374_vm1, %v1483_v7  ;;  %v1789_v7 = vld [vmem:[#allocation10 + $0x58] sm:$0xff] }
 0x7e0   :  { %2444 = vmatprep.mubr.msk.f32.mxu0 %vm3024_vm0, %v3022_v0 }
 0x7e2   :  { %2424 = vmatmul.mubr.msk.f32.vlgmr.msra.gmra.mrb[14].mxu1 %vm374_vm1, %v1401_v8  ;;  %v2622_v8 = vpack.c.bf16 %v1789_v7, %v1788_v6 }
 0x7e3   :  { %2437 = vmatprep.mubr.msk.f32.mxu1 %vm3024_vm0, %v3022_v0 }
 0x811   :  { %v969_v9 = vpop.f32.mrb[10].mxu1 }
 0x812   :  { %v2776_v10 = vpack.i.bf16 %v3338_v12, %v969_v9  ;;  %v2383_v11 = vpop.f32.mrb[11].mxu1  ;;  %v1790_v9 = vld [vmem:[#allocation10 + $0x60] sm:$0xff] }
 0x8a8   :  { %v1317_v34 = vpop.f32.mrb[12].mxu1 }
 0x8a9   :  { %v2411_v13 = vpop.f32.mrb[13].mxu1 }
 0x8aa   :  { %v1396_v14 = vpop.f32.mrb[18].mxu0  ;;  %v1793_v13 = vld [vmem:[#allocation10 + $0x78] sm:$0xff] }
 0x8ab   :  { %v2781_v16 = vpack.i.bf16 %v1396_v14, %v1317_v34  ;;  %v2418_v15 = vpop.f32.mrb[19].mxu0  ;;  %v1792_v34 = vld [vmem:[#allocation10 + $0x70] sm:$0xff] }
 0x8ac   :  { %v2630_v14 = vpack.c.bf16 %v1793_v13, %v1792_v34  ;;  %v1881_v15 = vld [vmem:[#allocation11 + $0x18] sm:$0xff] }
 0x8b2   :  { %v1560_v17 = vpop.f32.mrb[20].mxu0 }
 0x8b3   :  { %v1565_v20 = vmul.f32 0.088388346, %v1560_v17  ;;  %v2432_v22 = vpop.f32.mrb[21].mxu0  ;;  %v1878_v17 = vld [vmem:[#allocation11] sm:$0xff] }
 0x8b4   :  { %v1880_v22 = vld [vmem:[#allocation11 + $0x10] sm:$0xff] }
 0x8b5   :  { %v1478_v23 = vpop.f32.mrb[14].mxu1  ;;  %v1569_v25 = vsel %vm535_vm3, %v1565_v20, -inf }
 0x8b6   :  { %v1564_v27 = vmul.f32 0.088388346, %v1478_v23  ;;  %1570 = vmax.xlane.f32.xlu1 %v1569_v25  ;;  %v2425_v28 = vpop.f32.mrb[15].mxu1  ;;  %v1883_v23 = vld [vmem:[#allocation11 + $0x28] sm:$0xff]  ;;  %v1885_v25 = vld [vmem:[#allocation11 + $0x38] sm:$0xff] }
 0x8b7   :  { %v2638_v28 = vpack.c.bf16 %v1885_v25, %v1883_v23  ;;  %v1909_v23 = vld [vmem:[#allocation11 + $0xf8] sm:$0xff] }
 0x8b8   :  { %v1566_v29 = vsel %vm535_vm3, %v1564_v27, -inf }
 0x8b9   :  { %1567 = vmax.xlane.f32.xlu0 %v1566_v29  ;;  %v1882_v29 = vld [vmem:[#allocation11 + $0x20] sm:$0xff] }
 0x8c7   :  { %2772 = vrot.lane.b32.xlu1 %v3257_v52, %s3027_s23 }
 0x8cb   :  { %2777 = vrot.lane.b32.xlu1 %v2776_v10, %s3027_s23  ;;  %v1791_v10 = vld [vmem:[#allocation10 + $0x68] sm:$0xff] }
 0x8cc   :  { %v2626_v11 = vpack.c.bf16 %v1791_v10, %v1790_v9 }
 0x8cf   :  { %2782 = vrot.lane.b32.xlu1 %v2781_v16, %s3026_s21  ;;  %v1879_v16 = vld [vmem:[#allocation11 + $0x8] sm:$0xff] }
 0x943   :  { %v1571_v12 = vpop.xlane.xlu1 %1570 }
 0x944   :  { %v1573_v30 = vsub.f32 %v1565_v20, %v1571_v12  ;;  %v2634_v20 = vpack.c.bf16 %v1881_v15, %v1879_v16  ;;  %v1884_v12 = vld [vmem:[#allocation11 + $0x30] sm:$0xff] }
 0x946   :  { %v1568_v31 = vpop.xlane.xlu0 %1567  ;;  %v1576_v38 = vmul.f32 1.442695, %v1573_v30  ;;  %v1887_v30 = vld [vmem:[#allocation11 + $0x48] sm:$0xff] }
 0x947   :  { %v1572_v32 = vsub.f32 %v1564_v27, %v1568_v31  ;;  %v2773_v33 = vpop.permute.xlu1 %2772  ;;  %v2636_v27 = vpack.c.bf16 %v1880_v22, %v1878_v17  ;;  %v1889_v31 = vld [vmem:[#allocation11 + $0x58] sm:$0xff]  ;;  %v1907_v22 = vld [vmem:[#allocation11 + $0xe8] sm:$0xff] }
 0x948   :  { %v2775_v35 = vunpack.i.h.bf16 %v2773_v33  ;;  %v2774_v37 = vunpack.i.l.bf16 %v2773_v33  ;;  %v2640_v33 = vpack.c.bf16 %v1884_v12, %v1882_v29  ;;  %v2662_v25 = vpack.c.bf16 %v1909_v23, %v1907_v22  ;;  %v2020_v12 = vld [vmem:[#allocation13 + $0x88] sm:$0xff]  ;;  %v2017_v22 = vld [vmem:[#allocation13 + $0x70] sm:$0xff]  ;;  %v2018_v23 = vld [vmem:[#allocation13 + $0x78] sm:$0xff] }
 0x949   :  { %v1574_v40 = vmul.f32 1.442695, %v1572_v32 }
 0x94a   :  { %v2600_v41 = vpack.c.bf16 %v2775_v35, %v2774_v37  ;;  %v2642_v37 = vpack.c.bf16 %v1889_v31, %v1887_v30  ;;  %v2003_v30 = vld [vmem:[#allocation13] sm:$0xff] }
 0x94b   :  { %2815 = vpow2.f32 %v1574_v40  ;;  %v1888_v40 = vld [vmem:[#allocation11 + $0x50] sm:$0xff]  ;;  %v2778_v4 = vpop.permute.xlu1 %2777 }
 0x94c   :  { %2601 = vmatpush3.bf16.msra.mxu0 %v2600_v41  ;;  %2817 = vpow2.f32 %v1576_v38  ;;  %v1886_v38 = vld [vmem:[#allocation11 + $0x40] sm:$0xff]  ;;  %v2780_v6 = vunpack.i.h.bf16 %v2778_v4  ;;  %v2779_v7 = vunpack.i.l.bf16 %v2778_v4  ;;  %v2176_v4 = vld [vmem:[%s3435_s7] ss:$0 sm:$0xff] }
 0x94d   :  { %2635 = vmatprep.subr.bf16.mxu0 %v2634_v20 }
 0x955   :  { %v2816_v42 = vpop.eup %2815 }
 0x956   :  { %v1578_v52 = vsel %vm535_vm3, %v2816_v42, 0.0  ;;  %v2818_v44 = vpop.eup %2817 }
 0x957   :  { %1579 = vadd.xlane.f32.xlu0 %v1578_v52  ;;  %v1581_v45 = vsel %vm535_vm3, %v2818_v44, 0.0  ;;  %v1893_v52 = vld [vmem:[#allocation11 + $0x78] sm:$0xff] }
 0x95b   :  { %1582 = vadd.xlane.f32.xlu0 %v1581_v45 }
 0x971   :  { %2767 = vrot.lane.b32.xlu0 %v3243_v39, %s3027_s23  ;;  %v1778_v39 = vld [vmem:[#allocation10] sm:$0xff] }
 0x972   :  { %v2602_v58 = vpack.c.bf16 %v1779_v50, %v1778_v39  ;;  %v1899_v39 = vld [vmem:[#allocation11 + $0xa8] sm:$0xff]  ;;  %v1901_v50 = vld [vmem:[#allocation11 + $0xb8] sm:$0xff] }
 0x9e4   :  { %v1580_v46 = vpop.xlane.xlu0 %1579 }
 0x9e5   :  { %2819 = vrcp.f32 %v1580_v46  ;;  %v2644_v46 = vpack.c.bf16 %v1888_v40, %v1886_v38  ;;  %v2005_v38 = vld [vmem:[#allocation13 + $0x10] sm:$0xff]  ;;  %v2006_v40 = vld [vmem:[#allocation13 + $0x18] sm:$0xff] }
 0x9e8   :  { %v1583_v47 = vpop.xlane.xlu0 %1582 }
 0x9e9   :  { %2821 = vrcp.f32 %v1583_v47 }
 0x9ec   :  { %v2768_v48 = vpop.permute.xlu0 %2767 }
 0x9ed   :  { %v2770_v49 = vunpack.i.h.bf16 %v2768_v48  ;;  %v2769_v51 = vunpack.i.l.bf16 %v2768_v48  ;;  %v1890_v48 = vld [vmem:[#allocation11 + $0x60] sm:$0xff] }
 0x9ef   :  { %v2820_v54 = vpop.eup %2819  ;;  %v2597_v55 = vpack.c.bf16 %v2770_v49, %v2769_v51  ;;  %v1892_v49 = vld [vmem:[#allocation11 + $0x70] sm:$0xff]  ;;  %v1895_v51 = vld [vmem:[#allocation11 + $0x88] sm:$0xff] }
 0x9f0   :  { %v1585_v56 = vmul.f32 %v2820_v54, %v2816_v42  ;;  %v1891_v42 = vld [vmem:[#allocation11 + $0x68] sm:$0xff]  ;;  %v1897_v54 = vld [vmem:[#allocation11 + $0x98] sm:$0xff] }
 0x9f1   :  { %2598 = vmatpush3.bf16.msra.mxu1 %v2597_v55  ;;  %v2646_v47 = vpack.c.bf16 %v1893_v52, %v1891_v42  ;;  %v2648_v55 = vpack.c.bf16 %v1892_v49, %v1890_v48  ;;  %v2024_v42 = vld [vmem:[#allocation13 + $0xa8] sm:$0xff]  ;;  %v2672_v52 = vpack.c.bf16 %v2006_v40, %v2005_v38  ;;  %v2026_v48 = vld [vmem:[#allocation13 + $0xb8] sm:$0xff] }
 0x9f2   :  { %2603 = vmatprep.subr.bf16.mxu1 %v2602_v58 }
 0x9f3   :  { %v2822_v57 = vpop.eup %2821 }
 0x9f4   :  { %v1587_v36 = vmul.f32 %v2822_v57, %v2818_v44  ;;  %2438 = vmatmul.mubr.msk.f32.vlgmr.msra.gmra.mrb[16].mxu1 %vm535_vm3, %v1585_v56  ;;  %v2650_v56 = vpack.c.bf16 %v1897_v54, %v1895_v51  ;;  %v1894_v57 = vld [vmem:[#allocation11 + $0x80] sm:$0xff]  ;;  %v2009_v54 = vld [vmem:[#allocation13 + $0x30] sm:$0xff] }
 0x9f5   :  { %2605 = vmatpush3.bf16.msra.mxu1 %v2602_v58  ;;  %v2654_v58 = vpack.c.bf16 %v1901_v50, %v1899_v39  ;;  %v2011_v50 = vld [vmem:[#allocation13 + $0x40] sm:$0xff] }
 0x9f6   :  { %2445 = vmatmul.mubr.msk.f32.vlgmr.msra.gmra.mrb[22].mxu0 %vm535_vm3, %v1587_v36  ;;  %2607 = vmatprep.subr.bf16.mxu1 %v2606_v60  ;;  %v1896_v36 = vld [vmem:[#allocation11 + $0x90] sm:$0xff] }
 0x9f7   :  { %1986 = vmatprep.mubr.f32.mxu0 %v3022_v0  ;;  %2637 = vmatpush1.bf16.msra.mxu0 %v2636_v27  ;;  %v2652_v53 = vpack.c.bf16 %v1896_v36, %v1894_v57  ;;  %v1906_v27 = vld [vmem:[#allocation11 + $0xe0] sm:$0xff]  ;;  %v2028_v57 = vld [vmem:[#allocation13 + $0xc8] sm:$0xff] }
 0x9f8   :  { %2639 = vmatprep.subr.bf16.mxu0 %v2638_v28  ;;  %v1908_v28 = vld [vmem:[#allocation11 + $0xf0] sm:$0xff] }
 0x9f9   :  { %2609 = vmatpush3.bf16.msra.mxu1 %v2606_v60  ;;  %v1900_v60 = vld [vmem:[#allocation11 + $0xb0] sm:$0xff]  ;;  %v2664_v29 = vpack.c.bf16 %v1908_v28, %v1906_v27 }
 0x9fa   :  { %2611 = vmatprep.subr.bf16.mxu1 %v2610_v43  ;;  %v1910_v27 = vld [vmem:[%s3437_s9] sm:$0x3] }
 0x9fb   :  { %2641 = vmatpush1.bf16.msra.mxu0 %v2640_v33  ;;  %v2022_v33 = vld [vmem:[#allocation13 + $0x98] sm:$0xff]  ;;  %v1919_v28 = vrot.slane %v1910_v27, %v281_v21  ;;  %v2177_v21 = vld [vmem:[%s3439_s11] ss:$0 sm:$0xff] }
 0x9fc   :  { %2643 = vmatprep.subr.bf16.mxu0 %v2642_v37 }
 0x9fd   :  { %2613 = vmatpush3.bf16.msra.mxu1 %v2610_v43  ;;  %v2656_v43 = vpack.c.bf16 %v1900_v60, %v1898_v59  ;;  %v2030_v59 = vld [vmem:[#allocation13 + $0xd8] sm:$0xff] }
 0x9fe   :  { %2615 = vmatprep.subr.bf16.mxu1 %v2614_v2 }
 0x9ff   :  { %2645 = vmatpush1.bf16.msra.mxu0 %v2644_v46  ;;  %v2008_v46 = vld [vmem:[#allocation13 + $0x28] sm:$0xff] }
 0xa00   :  { %2647 = vmatprep.subr.bf16.mxu0 %v2646_v47  ;;  %v2025_v47 = vld [vmem:[#allocation13 + $0xb0] sm:$0xff] }
 0xa01   :  { %2617 = vmatpush3.bf16.msra.mxu1 %v2614_v2  ;;  %v1904_v2 = vld [vmem:[#allocation11 + $0xd0] sm:$0xff]  ;;  %v2678_v51 = vpack.c.bf16 %v2026_v48, %v2025_v47 }
 0xa02   :  { %2619 = vmatprep.subr.bf16.mxu1 %v2618_v5  ;;  %v2660_v3 = vpack.c.bf16 %v1904_v2, %v1902_v1  ;;  %v2032_v1 = vld [vmem:[#allocation13 + $0xe8] sm:$0xff] }
 0xa03   :  { %2649 = vmatpush1.bf16.msra.mxu0 %v2648_v55  ;;  %v2010_v55 = vld [vmem:[#allocation13 + $0x38] sm:$0xff] }
 0xa04   :  { %2651 = vmatprep.subr.bf16.mxu0 %v2650_v56  ;;  %v2027_v56 = vld [vmem:[#allocation13 + $0xc0] sm:$0xff]  ;;  %v2680_v36 = vpack.c.bf16 %v2010_v55, %v2009_v54 }
 0xa05   :  { %2621 = vmatpush3.bf16.msra.mxu1 %v2618_v5  ;;  %v2783_v5 = vpop.permute.xlu1 %2782  ;;  %v2682_v39 = vpack.c.bf16 %v2028_v57, %v2027_v56 }
 0xa06   :  { %2623 = vmatprep.subr.bf16.mxu1 %v2622_v8  ;;  %v2784_v9 = vunpack.i.l.bf16 %v2783_v5 }
 0xa07   :  { %2653 = vmatpush1.bf16.msra.mxu0 %v2652_v53  ;;  %v2012_v53 = vld [vmem:[#allocation13 + $0x48] sm:$0xff] }
 0xa08   :  { %2655 = vmatprep.subr.bf16.mxu0 %v2654_v58  ;;  %v2029_v58 = vld [vmem:[#allocation13 + $0xd0] sm:$0xff]  ;;  %v2684_v60 = vpack.c.bf16 %v2012_v53, %v2011_v50 }
 0xa09   :  { %2625 = vmatpush3.bf16.msra.mxu1 %v2622_v8  ;;  %v2785_v8 = vunpack.i.h.bf16 %v2783_v5  ;;  %v2686_v61 = vpack.c.bf16 %v2030_v59, %v2029_v58 }
 0xa0a   :  { %2627 = vmatprep.subr.bf16.mxu1 %v2626_v11 }
 0xa0b   :  { %2657 = vmatpush1.bf16.msra.mxu0 %v2656_v43  ;;  %v2014_v43 = vld [vmem:[#allocation13 + $0x58] sm:$0xff] }
 0xa0c   :  { %2659 = vmatprep.subr.bf16.mxu0 %v2658_v63  ;;  %v2031_v63 = vld [vmem:[#allocation13 + $0xe0] sm:$0xff]  ;;  %v2688_v2 = vpack.c.bf16 %v2014_v43, %v2013_v62 }
 0xa0d   :  { %2629 = vmatpush3.bf16.msra.mxu1 %v2626_v11  ;;  %v1771_v11 = vsel %vm374_vm1, %v3294_v26, %v2780_v6  ;;  %v2019_v26 = vld [vmem:[#allocation13 + $0x80] sm:$0xff] }
 0xa0e   :  { %2631 = vmatprep.subr.bf16.mxu1 %v2630_v14  ;;  %v1774_v16 = vsel %vm1772_vm4, %v1771_v11, %v2785_v8  ;;  %v2666_v31 = vpack.c.bf16 %v2020_v12, %v2019_v26  ;;  %v2824_v11 = vld [vmem:[#allocation2 + $0x8] sm:$0xff] }
 0xa0f   :  { %2661 = vmatpush1.bf16.msra.mxu0 %v2660_v3  ;;  %v2690_v3 = vpack.c.bf16 %v2032_v1, %v2031_v63 }
 0xa10   :  { %2663 = vmatprep.subr.bf16.mxu0 %v2662_v25  ;;  %v2696_v25 = vpack.c.bf16 %v2018_v23, %v2017_v22 }
 0xa11   :  { %2633 = vmatpush3.bf16.msra.mxu1 %v2630_v14  ;;  %v1770_v14 = vsel %vm374_vm1, %v3292_v24, %v2779_v7  ;;  %v2021_v24 = vld [vmem:[#allocation13 + $0x90] sm:$0xff] }
 0xa12   :  { %v1773_v15 = vsel %vm1772_vm4, %v1770_v14, %v2784_v9  ;;  %v2670_v37 = vpack.c.bf16 %v2022_v33, %v2021_v24  ;;  %2667 = vmatprep.subr.bf16.mxu1 %v2666_v31  ;;  %v2823_v9 = vld [vmem:[#allocation2] sm:$0xff]  ;;  %v2016_v14 = vld [vmem:[#allocation13 + $0x68] sm:$0xff] }
 0xa13   :  { %2665 = vmatpush1.bf16.msra.mxu0 %v2664_v29 }
 0xac7   :  { %v1663_v32 = vpop.f32.mrb[16].mxu1 }
 0xac8   :  { %v2439_v35 = vpop.f32.mrb[17].mxu1 }
 0xac9   :  { %v1742_v41 = vpop.f32.mrb[22].mxu0 }
 0xaca   :  { %v2786_v44 = vpack.i.bf16 %v1742_v41, %v1663_v32  ;;  %v2446_v45 = vpop.f32.mrb[23].mxu0  ;;  %v2004_v32 = vld [vmem:[#allocation13 + $0x8] sm:$0xff]  ;;  %v2023_v41 = vld [vmem:[#allocation13 + $0xa0] sm:$0xff] }
 0xacb   :  { %v2668_v35 = vpack.c.bf16 %v2004_v32, %v2003_v30  ;;  %v2007_v45 = vld [vmem:[#allocation13 + $0x20] sm:$0xff] }
 0xacc   :  { %2787 = vrot.lane.b32.xlu0 %v2786_v44, %s3025_s3  ;;  %v2674_v44 = vpack.c.bf16 %v2024_v42, %v2023_v41  ;;  %v2676_v49 = vpack.c.bf16 %v2008_v46, %v2007_v45 }
 0xb3e   :  { %v2788_v10 = vpop.permute.xlu0 %2787 }
 0xb3f   :  { %v2790_v34 = vunpack.i.h.bf16 %v2788_v10  ;;  %v2789_v13 = vunpack.i.l.bf16 %v2788_v10 }
 0xb41   :  { %v1776_v17 = vsel %vm1775_vm5, %v1773_v15, %v2789_v13  ;;  %v1777_v20 = vsel %vm1775_vm5, %v1774_v16, %v2790_v34  ;;  %v2015_v13 = vld [vmem:[#allocation13 + $0x60] sm:$0xff]  ;;  %v2033_v15 = vld [vmem:[#allocation13 + $0xf0] sm:$0xff] }
 0xb42   :  { %2479 = vmatprep.mubr.f32.mxu1 %v1776_v17  ;;  %v2692_v16 = vpack.c.bf16 %v2016_v14, %v2015_v13  ;;  %v2034_v17 = vld [vmem:[#allocation13 + $0xf8] sm:$0xff] }
 0xb43   :  { %2480 = vmatmul.mubr.f32.vlgmr.msra.gmra.mrb[18].mxu1 %v1777_v20  ;;  %v2694_v20 = vpack.c.bf16 %v2034_v17, %v2033_v15 }
 0xb44   :  { %2669 = vmatpush3.bf16.msra.mxu1 %v2668_v35 }
 0xb45   :  { %2671 = vmatprep.subr.bf16.mxu1 %v2670_v37 }
 0xb48   :  { %2673 = vmatpush3.bf16.msra.mxu1 %v2672_v52 }
 0xb49   :  { %2675 = vmatprep.subr.bf16.mxu1 %v2674_v44 }
 0xb4c   :  { %2677 = vmatpush3.bf16.msra.mxu1 %v2676_v49 }
 0xb4d   :  { %2679 = vmatprep.subr.bf16.mxu1 %v2678_v51 }
 0xb50   :  { %2681 = vmatpush3.bf16.msra.mxu1 %v2680_v36 }
 0xb51   :  { %2683 = vmatprep.subr.bf16.mxu1 %v2682_v39 }
 0xb54   :  { %2685 = vmatpush3.bf16.msra.mxu1 %v2684_v60 }
 0xb55   :  { %2687 = vmatprep.subr.bf16.mxu1 %v2686_v61 }
 0xb58   :  { %2689 = vmatpush3.bf16.msra.mxu1 %v2688_v2 }
 0xb59   :  { %2691 = vmatprep.subr.bf16.mxu1 %v2690_v3 }
 0xb5c   :  { %2693 = vmatpush3.bf16.msra.mxu1 %v2692_v16 }
 0xb5d   :  { %2695 = vmatprep.subr.bf16.mxu1 %v2694_v20 }
 0xb60   :  { %2697 = vmatpush3.bf16.msra.mxu1 %v2696_v25 }
 0xc16   :  { %v2481_v5 = vpop.f32.mrb[18].mxu1 }
 0xc17   :  { %v1867_v6 = vpop.f32.mrb[19].mxu1  ;;  %v1873_v8 = vadd.f32 %v2481_v5, %v2176_v4 }
 0xc18   :  { %v1868_v7 = vadd.f32 %v2176_v4, %v1867_v6 }
 0xc19   :  { %v1877_v34 = vadd.f32 %v2824_v11, %v1873_v8 }
 0xc1a   :  { %v1876_v10 = vadd.f32 %v2823_v9, %v1868_v7 }
 0xc1c   :  { %1987 = vmatmul.mubr.f32.vlgmr.msra.gmra.mrb[24].mxu0 %v1876_v10 }
 0xc1d   :  { %1992 = vmatprep.mubr.f32.mxu0 %v3022_v0  ;;  %v1915_v0 = vrot.slane %v1910_v27, %v277_v19 }
 0xc20   :  { %1993 = vmatmul.mubr.f32.gmra.mrb[26].mxu0 %v1877_v34 }
 0xcef   :  { %v1988_v29 = vpop.f32.mrb[24].mxu0 }
 0xcf0   :  { %v1989_v26 = vadd.f32 %v1988_v29, %v1915_v0  ;;  %v1990_v12 = vpop.f32.mrb[25].mxu0 }
 0xcf1   :  { %v1991_v30 = vadd.f32 %v1990_v12, %v1919_v28 }
 0xcf2   :  { %v1999_v24 = vmax.f32 %v1989_v26, 0.0 }
 0xcf3   :  { %v2000_v31 = vmax.f32 %v1991_v30, 0.0  ;;  %v1994_v32 = vpop.f32.mrb[26].mxu0 }
 0xcf4   :  { %v1995_v33 = vadd.f32 %v1994_v32, %v1915_v0  ;;  %v1996_v35 = vpop.f32.mrb[27].mxu0 }
 0xcf5   :  { %v1997_v37 = vadd.f32 %v1996_v35, %v1919_v28  ;;  %2099 = vmatprep.mubr.f32.mxu1 %v2000_v31 }
 0xcf6   :  { %2100 = vmatmul.mubr.f32.vlgmr.msra.gmra.mrb[20].mxu1 %v1999_v24  ;;  %v2001_v40 = vmax.f32 %v1995_v33, 0.0 }
 0xcf7   :  { %v2002_v38 = vmax.f32 %v1997_v37, 0.0 }
 0xcf9   :  { %2104 = vmatprep.mubr.f32.mxu1 %v2002_v38 }
 0xcfa   :  { %2105 = vmatmul.mubr.f32.gmra.mrb[22].mxu1 %v2001_v40 }
 0xdc9   :  { %v2294_v19 = vpop.f32.mrb[20].mxu1 }
 0xdca   :  { %v2295_v41 = vpop.f32.mrb[21].mxu1 }
 0xdcb   :  { %v2296_v18 = vadd.f32 %v2295_v41, %v2294_v19 }
 0xdcd   :  { %v2110_v42 = vadd.f32 %v2296_v18, %v1876_v10  ;;  %v2297_v52 = vpop.f32.mrb[22].mxu1 }
 0xdce   :  { %v2298_v44 = vpop.f32.mrb[23].mxu1 }
 0xdcf   :  { %v2119_v45 = vadd.f32 %v2177_v21, %v2110_v42  ;;  %v2299_v46 = vadd.f32 %v2298_v44, %v2297_v52 }
 0xdd1   :  { %2121 = vst [vmem:[#allocation14] sm:$0xff] %v2119_v45  ;;  %v2111_v47 = vadd.f32 %v2299_v46, %v1877_v34 }
 0xdd3   :  { %v2120_v48 = vadd.f32 %v2177_v21, %v2111_v47 }
 0xdd5   :  { %2122 = vst [vmem:[#allocation14 + $0x8] sm:$0xff] %v2120_v48 }
 0xdd6   :  { %2990 = shalt.err (!%p2987_p4)
}
 0xdd7   :  { %s2991_s24 = scalar_lea.hbm %s3440_s12, 256 }
 0xdd8   :  { %p2992_p5 = scmp.ne.s32.totalorder %s3440_s12, %s2991_s24  ;;  %p2995_p6 = scmp.lt.u32.totalorder %s2991_s24, %s3440_s12 }
 0xdda   :  { %p2997_p7 = pnand %p2995_p6, %p2992_p5 }
 0xddc   :  { %3000 = shalt.err (!%p2997_p7)
}
 0xddd   :  { %2134 = dma.vmem_to_hbm [thread:$0]  %s2129_s14, 256, %s3440_s12, [#allocation4], %s3013_s15, %s3013_s15, %s3014_s16  }
 0xdde   :  { %3009 = dma.done.wait [#allocation4], 256  }
 0xddf   :  { %3010 = vsyncadd [#allocation4], 4294967040 }
 0xde0   :  { %2138 = vsyncpa [#allocation3], 1 }
 0xde1   :  { %2139 = vsyncpa [#allocation6], 1 }
 0xde2   :  { %2140 = vsyncpa [#allocation9], 1 }
 0xde3   :  { %2141 = vsyncpa [#allocation12], 1 }
 0xde4   :  { %2142 = vsyncpa [#allocation4], 1 }

</bundles_post_ra>
